<compile_context>
chip_gen: v6e
topology: v6e:2x2x1
jax: 0.10.0
libtpu: 0.0.40
codegen_flags: <defaults>
</compile_context>

<pallas_src>
import functools
import math

import jax
import jax.numpy as jnp
from jax.experimental import pallas as pl
from jax.experimental.pallas import tpu as pltpu

_SUBLANE = 8


def _round_up(x, m):
    return ((x + m - 1) // m) * m


def _sine_layer_kernel(x_ref, w_ref, b_ref, o_ref, *, omega_0):
    # x_ref: (tile_b, in_f), w_ref: (in_f, out_f), b_ref: (1, out_f)
    # MXU matmul with f32 accumulation; bias add / scale / sin in f32 on the
    # VPU/EUP (bf16 is too coarse for sin at omega_0=30); cast once on store.
    z = jnp.dot(x_ref[...], w_ref[...], preferred_element_type=jnp.float32)
    z = z + b_ref[...].astype(jnp.float32)
    o_ref[...] = jnp.sin(omega_0 * z).astype(o_ref.dtype)


def _chip_config():
    """Generation-aware VMEM budget / compiler limit / pipeline depth.

    Config-only query: a failed probe falls back to conservative (v7x-safe)
    defaults and never changes the kernel structure, only tile sizing.
    """
    vmem_cap = 64 << 20  # conservative default (v7x per-TC physical)
    try:
        info = pltpu.get_tpu_info()
        vmem_cap = int(getattr(info, "vmem_capacity_bytes", vmem_cap))
    except Exception:
        pass
    if vmem_cap <= (64 << 20):
        # v7x-like: 64 MiB physical / 32 MiB scoped per TC, grid sharded over
        # 2 TensorCores -> keep >= 3-4 steps per TC, don't push the limit.
        return dict(vmem_budget=24 << 20, vmem_limit=48 << 20,
                    max_tile_b=2048, min_grid_steps=8)
    # v5e / v6e: 128 MiB physical VMEM, single TensorCore -> large tiles to
    # amortize the ~0.35 us/step overhead on this mem-bound kernel.
    return dict(vmem_budget=48 << 20, vmem_limit=96 << 20,
                max_tile_b=8192, min_grid_steps=3)


def _pick_tile_b(batch, in_f, out_f, x_bytes, w_bytes, o_bytes, *,
                 vmem_budget_bytes, max_tile_b, min_grid_steps):
    """Largest batch tile that fits the VMEM budget (incl. f32 intermediate)."""
    # W / bias get two buffers from the default pipeliner (only DMA'd once
    # since their block index never changes, but the allocation is 2x).
    weight_bytes = 2 * (in_f * out_f + out_f) * w_bytes
    # Per batch-row VMEM: double-buffered x tile + double-buffered out tile
    # + the f32 (tile_b, out_f) matmul/bias/sin intermediate.
    per_row = 2 * in_f * x_bytes + 2 * out_f * o_bytes + out_f * 4
    avail = max(vmem_budget_bytes - weight_bytes, _SUBLANE * per_row)
    tile = min(avail // per_row, max_tile_b, _round_up(batch, _SUBLANE))
    # Keep enough grid steps for DMA/compute overlap (and per-TC work on v7x).
    if batch > min_grid_steps * _SUBLANE:
        tile = min(tile, _round_up(pl.cdiv(batch, min_grid_steps), _SUBLANE))
    return int(max(_SUBLANE, (tile // _SUBLANE) * _SUBLANE))


def sine_layer(x, w_t, b, *, omega_0=30.0, tile_b=None, out_dtype=None):
    """x: [B, in_f], w_t: [in_f, out_f] (pre-transposed W), b: [out_f]/[1, out_f].

    Pass bf16 x / w_t (and leave out_dtype=None) for the low-HBM-traffic
    chained-layer path; accumulation and the sine stay in f32 either way.
    """
    B, in_f = x.shape
    in_f2, out_f = w_t.shape
    assert in_f == in_f2
    b = jnp.asarray(b).reshape(1, out_f)
    out_dtype = x.dtype if out_dtype is None else jnp.dtype(out_dtype)

    cfg = _chip_config()
    if tile_b is None:
        tile_b = _pick_tile_b(
            B, in_f, out_f,
            x.dtype.itemsize, w_t.dtype.itemsize, jnp.dtype(out_dtype).itemsize,
            vmem_budget_bytes=cfg["vmem_budget"],
            max_tile_b=cfg["max_tile_b"],
            min_grid_steps=cfg["min_grid_steps"])
    tile_b = max(_SUBLANE, (int(tile_b) // _SUBLANE) * _SUBLANE)
    if B < _SUBLANE:
        tile_b = B  # block equals full array dim -> allowed without 8-alignment

    # No pad, no slice: the grid covers B with cdiv; the trailing partial block
    # (if any) is masked by Pallas on load and store.
    grid = (pl.cdiv(B, tile_b),)

    kernel = functools.partial(_sine_layer_kernel, omega_0=float(omega_0))
    cost = pl.CostEstimate(
        flops=2 * B * in_f * out_f,
        transcendentals=B * out_f,
        bytes_accessed=(B * in_f * x.dtype.itemsize
                        + B * out_f * jnp.dtype(out_dtype).itemsize
                        + (in_f * out_f + out_f) * w_t.dtype.itemsize),
    )

    return pl.pallas_call(
        kernel,
        out_shape=jax.ShapeDtypeStruct((B, out_f), out_dtype),
        grid_spec=pltpu.PrefetchScalarGridSpec(
            num_scalar_prefetch=0,
            grid=grid,
            in_specs=[
                pl.BlockSpec((tile_b, in_f), lambda i: (i, 0)),   # x tile
                pl.BlockSpec((in_f, out_f), lambda i: (0, 0)),    # full W^T (DMA'd once)
                pl.BlockSpec((1, out_f), lambda i: (0, 0)),       # bias
            ],
            out_specs=pl.BlockSpec((tile_b, out_f), lambda i: (i, 0)),
        ),
        compiler_params=pltpu.CompilerParams(
            dimension_semantics=("parallel",),
            vmem_limit_bytes=cfg["vmem_limit"],
        ),
        cost_estimate=cost,
    )(x, w_t, b)


if __name__ == "__main__":
    # Lane-dense config: in/out features are multiples of 128 so x tiles and
    # output stores are unmasked full vector ops.
    in_features = 128
    out_features = 256
    batch = 512
    omega_0 = 30.0
    is_first = True

    key = jax.random.PRNGKey(0)
    kw, kb, kx, kx2 = jax.random.split(key, 4)

    # Deterministic SIREN-style init (mirrors SineLayer.init_weights).
    if is_first:
        w_bound = 1.0 / in_features
    else:
        w_bound = math.sqrt(6.0 / in_features) / omega_0
    # nn.Linear weight layout: [out_features, in_features].
    weight = jax.random.uniform(
        kw, (out_features, in_features), jnp.float32, -w_bound, w_bound)
    # nn.Linear default bias init: U(-1/sqrt(in_features), 1/sqrt(in_features)).
    b_bound = 1.0 / math.sqrt(in_features)
    bias = jax.random.uniform(
        kb, (1, out_features), jnp.float32, -b_bound, b_bound)

    # Materialize W^T once at "init time", not per forward.
    w_t = jnp.asarray(weight.T)

    def ref_fn(inp, w_t_, b_):
        z = jnp.dot(inp.astype(jnp.float32), w_t_.astype(jnp.float32),
                    precision=jax.lax.Precision.HIGHEST) + b_.astype(jnp.float32)
        return jnp.sin(omega_0 * z)

    # SIREN-style coordinate inputs in [-1, 1].
    x = jax.random.uniform(kx, (batch, in_features), jnp.float32, -1.0, 1.0)
    out = jax.block_until_ready(sine_layer(x, w_t, bias, omega_0=omega_0))
    assert out.shape == (batch, out_features) and out.dtype == jnp.float32
    # omega_0=30 amplifies matmul rounding ~30x and the MXU pass decomposition
    # may differ from XLA's HIGHEST reference; tolerance accounts for that.
    assert jnp.allclose(out, ref_fn(x, w_t, bias), atol=2e-2, rtol=2e-2)

    # Ragged batch: exercises the masked partial last block (no pad / slice).
    x2 = jax.random.uniform(kx2, (300, in_features), jnp.float32, -1.0, 1.0)
    out2 = jax.block_until_ready(sine_layer(x2, w_t, bias, omega_0=omega_0))
    assert out2.shape == (300, out_features) and out2.dtype == jnp.float32
    assert jnp.allclose(out2, ref_fn(x2, w_t, bias), atol=2e-2, rtol=2e-2)

    # bf16 I/O path (chained SIREN layers): halves HBM traffic; f32 accumulate
    # and f32 bias/scale/sin stay inside the kernel.
    xb = x.astype(jnp.bfloat16)
    wb = w_t.astype(jnp.bfloat16)
    out3 = jax.block_until_ready(sine_layer(xb, wb, bias, omega_0=omega_0))
    assert out3.shape == (batch, out_features) and out3.dtype == jnp.bfloat16
    assert jnp.allclose(out3.astype(jnp.float32), ref_fn(xb, wb, bias),
                        atol=5e-2, rtol=5e-2)

    print("KERNEL_OK")
</pallas_src>

<mosaic_0001>
module attributes {stable_mosaic.version = 11 : i64} {
  func.func @_sine_layer_kernel(%arg0: i32, %arg1: memref<64x128xf32, #tpu.memory_space<vmem>>, %arg2: memref<128x256xf32, #tpu.memory_space<vmem>>, %arg3: memref<1x256xf32, #tpu.memory_space<vmem>>, %arg4: memref<64x256xf32, #tpu.memory_space<vmem>>) attributes {dimension_semantics = [#tpu.dimension_semantics<parallel>], iteration_bounds = array<i64: 8>, scalar_prefetch = 0 : i64, scratch_operands = 0 : i64, tpu.core_type = #tpu.core_type<tc>, window_params = [{transform_indices = @transform_0, window_bounds = array<i64: 64, 128>}, {pipeline_mode = #tpu.pipeline_mode<synchronous>, transform_indices = @transform_1, window_bounds = array<i64: 128, 256>}, {pipeline_mode = #tpu.pipeline_mode<synchronous>, transform_indices = @transform_2, window_bounds = array<i64: 1, 256>}, {transform_indices = @transform_3, window_bounds = array<i64: 64, 256>}]} {
    %c0 = arith.constant 0 : index
    %c0_0 = arith.constant 0 : index
    %0 = vector.load %arg1[%c0, %c0_0] : memref<64x128xf32, #tpu.memory_space<vmem>>, vector<64x128xf32>
    %c0_1 = arith.constant 0 : index
    %c0_2 = arith.constant 0 : index
    %1 = vector.load %arg2[%c0_1, %c0_2] : memref<128x256xf32, #tpu.memory_space<vmem>>, vector<128x256xf32>
    %cst = arith.constant dense<0.000000e+00> : vector<64x256xf32>
    %2 = tpu.matmul %0, %1, %cst {dimension_numbers = #tpu.dot_dimension_numbers<[1], [0], [0], [1], [0, 0, 1, 1], [], []>} : vector<64x128xf32>, vector<128x256xf32>, vector<64x256xf32> -> vector<64x256xf32>
    %c0_3 = arith.constant 0 : index
    %c0_4 = arith.constant 0 : index
    %3 = vector.load %arg3[%c0_3, %c0_4] : memref<1x256xf32, #tpu.memory_space<vmem>>, vector<1x256xf32>
    %4 = vector.broadcast %3 : vector<1x256xf32> to vector<64x256xf32>
    %5 = arith.addf %2, %4 : vector<64x256xf32>
    %cst_5 = arith.constant 3.000000e+01 : f32
    %6 = vector.broadcast %cst_5 : f32 to vector<64x256xf32>
    %7 = arith.mulf %6, %5 : vector<64x256xf32>
    %8 = math.sin %7 : vector<64x256xf32>
    %c0_6 = arith.constant 0 : index
    %c0_7 = arith.constant 0 : index
    %9 = vector.load %arg4[%c0_6, %c0_7] : memref<64x256xf32, #tpu.memory_space<vmem>>, vector<64x256xf32>
    tpu.vector_store %arg4[%c0_6, %c0_7], %8 {strides = array<i32>} : memref<64x256xf32, #tpu.memory_space<vmem>>, vector<64x256xf32>,
    return
  }
  func.func @transform_0(%arg0: i32) -> (i32, i32) {
    %c0_i32 = arith.constant 0 : i32
    %c0_i32_0 = arith.constant 0 : i32
    return %arg0, %c0_i32 : i32, i32
  }
  func.func @transform_1(%arg0: i32) -> (i32, i32) {
    %c0_i32 = arith.constant 0 : i32
    %c0_i32_0 = arith.constant 0 : i32
    %c0_i32_1 = arith.constant 0 : i32
    return %c0_i32, %c0_i32_0 : i32, i32
  }
  func.func @transform_2(%arg0: i32) -> (i32, i32) {
    %c0_i32 = arith.constant 0 : i32
    %c0_i32_0 = arith.constant 0 : i32
    %c0_i32_1 = arith.constant 0 : i32
    return %c0_i32, %c0_i32_0 : i32, i32
  }
  func.func @transform_3(%arg0: i32) -> (i32, i32) {
    %c0_i32 = arith.constant 0 : i32
    %c0_i32_0 = arith.constant 0 : i32
    return %arg0, %c0_i32 : i32, i32
  }
}

</mosaic_0001>

<bundles_post_ra>
// kernel: tpu_custom_call.1
= control target key start
LH: loop header
LB: loop body
LE: loop exit
PB: predicated region body
PF: predicated region fallthrough
CT: control target
= control target key end

     0   :  { %8 = vsyncpa [#allocation3], 0  ;;  %s4127_s0 = inlined_call_operand.hbm [shape: f32[512,128], index: 0, kind: input, shape index: {}]   ;;  %s4128_s1 = inlined_call_operand.hbm [shape: f32[128,256], index: 1, kind: input, shape index: {}]   ;;  %s4129_s2 = inlined_call_operand.vmem [shape: f32[1,256], index: 2, kind: input, shape index: {}]   ;;  %s4130_s3 = inlined_call_operand.hbm [shape: f32[512,256], index: 3, kind: output, shape index: {}]  }
   0x1   :  { %10 = vsyncpa [#allocation3 + $0x1], 0 }
   0x2   :  { %11 = vsyncpa [#allocation6], 0 }
   0x3   :  { %12 = vsyncpa [#allocation4], 0 }
   0x4   :  { %14 = vsyncpa [#allocation4 + $0x1], 0  ;;  %s2639_s12 = smov 0   ;;  %s2641_s13 = smov 0  }
   0x5   :  { %s2643_s14 = smov 0   ;;  %s2645_s15 = smov 0  }
   0x6 LB: > { %s2660_s16 = sadd.s32 4294967295, %s2601_s15   ;;  %s2165_s17 = sadd.s32 4294967294, %s2601_s15   ;;  %s2601_s15 = sphi %s2645_s15, %s4179_s15   ;;  %s2597_s14 = sphi %s2643_s14, %s4178_s14   ;;  %s2593_s13 = sphi %s2641_s13, %s4177_s13   ;;  %s2589_s12 = sphi %s2639_s12, %s4176_s12  }
   0x7   : > { %p40_p0 = scmp.ne.s32.totalorder %s2593_s13, %s2589_s12  ;;  %p4131_p1 = scmp.eq.s32.totalorder %s2660_s16, 0 }
   0x8   : > { %p112_p3 = scmp.eq.s32.totalorder %s2165_s17, 7  ;;  %p2166_p5 = scmp.ge.s32.totalorder %s2601_s15, 1 }
   0x9   : > { %p2669_p4 = por %p4131_p1, %p40_p0  ;;  %p119_p7 = scmp.lt.s32.totalorder %s2601_s15, 9 }
   0xa   : > { %p2674_p6 = por %p112_p3, %p40_p0  ;;  %s2603_s21 = smov [#allocation5]  }
   0xb   : > { %s4135_s18 = scalar_select %p2669_p4, 1, 0 }
   0xc   : > { %s4136_s19 = scalar_select %p2674_p6, 1, 0 }
   0xd   : > { %p2679_p8 = pnand %p2166_p5, %p119_p7  ;;  %s131_s22 = sshll.u32 %s2603_s21, 4  ;;  %s132_s22 = int_to_ptr.vmem [resolvable:$true] %s131_s22 }
   0xe   : > { %s2692_s24 = sadd.s32 1, %s2601_s15   ;;  %s27_s25 = sadd.s32 1, %s2597_s14 }
   0xf   : > { %s4137_s20 = scalar_select %p2679_p8, 1, 0 }
  0x10   : > { %p2353_p9 = pneg %p2679_p8  ;;  %s24_s26 = ssub.s32 %s2601_s15, %s2692_s24 }
  0x11   : > { %s2490_s27 = scalar_lea.vmem %s132_s22, 4096  ;;  %p2498_p3 = scmp.lt.s32.totalorder %s132_s22, %s132_s22 }
  0x12   : > { %p2687_p10 = pnand %p2353_p9, %p4131_p1  ;;  %p2491_p12 = scmp.ne.s32.totalorder %s132_s22, %s2490_s27 }
  0x13   : > { %p2499_p5 = scmp.lt.s32.totalorder %s2490_s27, %s2490_s27 }
  0x14   : > { %p2481_p11 = pneg %p2687_p10 }
  0x15   : > { %p2500_p7 = por %p2499_p5, %p2498_p3 }
  0x16   : > { %p2493_p13 = pnand %p2491_p12, %p2481_p11 }
  0x18   : > { %p2494_p0 = pneg %p2493_p13 }
  0x1a   : > { %p2501_p2 = pnand %p2500_p7, %p2494_p0 }
  0x1c   : > { %2504 = shalt.err (!%p2501_p2)
}
  0x1d   : > { %s2604_s28 = smov 256   ;;  %s2605_s29 = smov 16  }
  0x1e   : > { %2356 = dma.hbm_to_vmem [thread:$0]  (!%p2687_p10), %s4128_s1, 4096, %s132_s22, [#allocation6], %s2604_s28, %s2604_s28, %s2605_s29  }
  0x1f   : > { %p25_p9 = scmp.eq.s32.totalorder %s24_s26, 0  ;;  %p34_p11 = scmp.ne.s32.totalorder %s2597_s14, %s2593_s13 }
  0x20   : > { %p35_p12 = scmp.eq.s32.totalorder %s2601_s15, 0  ;;  %p2366_p2 = scmp.lt.s32.totalorder %s2601_s15, 8 }
  0x21   : > { %s2709_s5 = scalar_select %p25_p9, %s2597_s14, %s27_s25  }
  0x22   : > { %p36_p13 = por %p35_p12, %p34_p11  ;;  %p4139_p0 = scmp.eq.s32.totalorder %s2660_s16, 7 }
  0x23   : > { %s148_s7 = sand.u32 1, %s2597_s14   ;;  %s2246_s8 = sshll.u32 %s2601_s15, 10 }
  0x24   : > { %p2713_p3 = por %p4139_p0, %p34_p11  ;;  %s2169_s9 = sshll.u32 %s148_s7, 6 }
  0x25   : > { %s2722_s17 = scalar_lea.hbm %s4127_s0, %s2246_s8  ;;  %s152_s21 = scalar_lea.vmem [#allocation2], %s2169_s9 }
  0x26   : > { %s4140_s6 = scalar_select %p2713_p3, 1, 0 }
  0x27   : > { %s159_s22 = sshll.u32 %s152_s21, 4  ;;  %p2724_p10 = pnand %p2366_p2, %p36_p13  ;;  %s2728_s22 = int_to_ptr.vmem [resolvable:$true] %s159_s22 }
  0x28   : > { %s2730_s25 = scalar_lea.sflag [#allocation3], %s148_s7  ;;  %s2505_s26 = scalar_lea.hbm %s2722_s17, 1024 }
  0x29   : > { %p2506_p5 = scmp.ne.s32.totalorder %s2722_s17, %s2505_s26  ;;  %p2507_p7 = pneg %p2724_p10 }
  0x2a   : > { %s2510_s29 = scalar_lea.hbm %s4127_s0, 8192  ;;  %p2511_p12 = scmp.lt.s32.totalorder %s2722_s17, %s4127_s0 }
  0x2b   : > { %p2508_p9 = pnand %p2507_p7, %p2506_p5  ;;  %p2512_p2 = scmp.lt.s32.totalorder %s2510_s29, %s2505_s26 }
  0x2d   : > { %p2509_p11 = pneg %p2508_p9  ;;  %p2513_p13 = por %p2512_p2, %p2511_p12 }
  0x2f   : > { %p2514_p0 = pnand %p2513_p13, %p2509_p11 }
  0x31   : > { %2517 = shalt.err (!%p2514_p0)
}
  0x32   : > { %s2518_s7 = scalar_lea.vmem %s2728_s22, 1024  ;;  %s2606_s8 = smov [#allocation2]  }
  0x33   : > { %p2519_p1 = scmp.ne.s32.totalorder %s2728_s22, %s2518_s7  ;;  %s2523_s9 = sshll.u32 %s2606_s8, 4  ;;  %s2524_s9 = int_to_ptr.vmem [resolvable:$false] %s2523_s9 }
  0x34   : > { %s2525_s10 = scalar_lea.vmem %s2524_s9, 2048  ;;  %p2526_p9 = scmp.lt.s32.totalorder %s2728_s22, %s2524_s9 }
  0x35   : > { %p2521_p6 = pnand %p2519_p1, %p2507_p7  ;;  %p2527_p3 = scmp.lt.s32.totalorder %s2525_s10, %s2518_s7 }
  0x37   : > { %p2522_p5 = pneg %p2521_p6  ;;  %p2528_p4 = por %p2527_p3, %p2526_p9 }
  0x39   : > { %p2529_p8 = pnand %p2528_p4, %p2522_p5 }
  0x3b   : > { %2532 = shalt.err (!%p2529_p8)
}
  0x3c   : > { %s2607_s11 = smov 128   ;;  %s2608_s21 = smov 8  }
  0x3d   : > { %2360 = dma.hbm_to_vmem [thread:$0]  (!%p2724_p10), %s2722_s17, 1024, %s2728_s22, %s2730_s25, %s2607_s11, %s2607_s11, %s2608_s21  }
  0x3e   : > { %p4142_p1 = scmp.ne.s32.totalorder %s4137_s20, 0 }
  0x3f   : > { %s2754_s26 = sand.u32 (!%p4142_p1), 1, %s2593_s13   ;;  %p4143_p4 = scmp.ne.s32.totalorder (!%p4142_p1), %s4135_s18, 0 }
  0x40   : > { %171 = sbr.rel (%p4142_p1) target bundleno = 756 (0x2f4), region = 32  ;;  %s2173_s27 = sshll.u32 (!%p4142_p1), %s2754_s26, 6 }
  0x41   : > { %s174_s28 = scalar_lea.sflag (!%p4142_p1), [#allocation3], %s2754_s26  ;;  %s2758_s29 = scalar_lea.vmem (!%p4142_p1), [#allocation2], %s2173_s27 }
  0x45   : > { %2576 = dma.done.wait (%p4143_p4), %s174_s28, 1024  }
  0x46   : > { %2578 = vsyncadd (%p4143_p4), %s174_s28, 4294966272  ;;  %p4144_p6 = scmp.eq.s32.totalorder %s2660_s16, 0 }
  0x48   : > { %2580 = dma.done.wait (%p4144_p6), [#allocation6], 4096   ;;  %p4145_p8 = pmov %p4144_p6 }
  0x49   : > { %v2609_v0 = vmov 0.0   ;;  %v245_v1 = vld [vmem:[#allocation5 + $0xf8] sm:$0xff]  ;;  %v244_v2 = vld [vmem:[#allocation5 + $0xf0] sm:$0xff]  ;;  %v243_v3 = vld [vmem:[#allocation5 + $0xe8] sm:$0xff]  ;;  %v248_v41 = vlaneseq  ;;  %s2175_s17 = sshll.u32 %s2754_s26, 7  ;;  %s2248_s23 = sshll.u32 %s2660_s16, 11 }
  0x4a   : > { %2582 = vsyncadd (%p4145_p8), [#allocation6], 4294963200  ;;  %322 = vmatprep.mubr.f32.mxu0 %v2609_v0  ;;  %346 = vmatprep.mubr.f32.mxu1 %v2609_v0  ;;  %v242_v4 = vld [vmem:[#allocation5 + $0xe0] sm:$0xff]  ;;  %v241_v5 = vld [vmem:[#allocation5 + $0xd8] sm:$0xff]  ;;  %s3092_s22 = scalar_lea.vmem [#allocation7], %s2175_s17  ;;  %s4081_s7 = scalar_lea.hbm %s4130_s3, %s2248_s23 }
  0x4b   : > { %258 = vmatprep.subr.mxu0 %v245_v1  ;;  %2249 = vmatprep.subr.mxu1 %v245_v1  ;;  %v240_v6 = vld [vmem:[#allocation5 + $0xd0] sm:$0xff]  ;;  %v239_v7 = vld [vmem:[#allocation5 + $0xc8] sm:$0xff]  ;;  %v238_v8 = vld [vmem:[#allocation5 + $0xc0] sm:$0xff]  ;;  %v249_v42 = vshrl.u32 %v248_v41, 7  ;;  %s2082_s25 = sshll.u32 %s3092_s22, 4  ;;  %s2068_s16 = scalar_lea.sflag [#allocation4], %s2754_s26  ;;  %s4083_s25 = int_to_ptr.vmem [resolvable:$true] %s2082_s25 }
  0x4c   : > { %259 = vmatpush1.msra.mxu0 %v244_v2  ;;  %2265 = vmatpush1.msra.mxu1 %v244_v2  ;;  %v237_v9 = vld [vmem:[#allocation5 + $0xb8] sm:$0xff]  ;;  %v236_v10 = vld [vmem:[#allocation5 + $0xb0] sm:$0xff]  ;;  %v235_v11 = vld [vmem:[#allocation5 + $0xa8] sm:$0xff]  ;;  %s2533_s8 = scalar_lea.vmem %s4083_s25, 2048  ;;  %p4174_p10 = scmp.ne.s32.totalorder %s4140_s6, 0 }
  0x4d   : > { %260 = vmatprep.subr.mxu0 %v243_v3  ;;  %2250 = vmatprep.subr.mxu1 %v243_v3  ;;  %v234_v12 = vld [vmem:[#allocation5 + $0xa0] sm:$0xff]  ;;  %v233_v13 = vld [vmem:[#allocation5 + $0x98] sm:$0xff]  ;;  %v232_v14 = vld [vmem:[#allocation5 + $0x90] sm:$0xff]  ;;  %v250_v43 = vsub.s32 0, %v249_v42  ;;  %v254_v45 = vsub.s32 1, %v249_v42  ;;  %p2534_p3 = scmp.ne.s32.totalorder %s4083_s25, %s2533_s8  ;;  %s2616_s9 = smov [#allocation7]  }
  0x4e   : > { %261 = vmatpush1.msra.mxu0 %v242_v4  ;;  %2266 = vmatpush1.msra.mxu1 %v242_v4  ;;  %v231_v15 = vld [vmem:[#allocation5 + $0x88] sm:$0xff]  ;;  %v230_v16 = vld [vmem:[#allocation5 + $0x80] sm:$0xff]  ;;  %v229_v17 = vld [vmem:[#allocation5 + $0x78] sm:$0xff]  ;;  %s2537_s10 = sshll.u32 %s2616_s9, 4  ;;  %s2538_s10 = int_to_ptr.vmem [resolvable:$false] %s2537_s10 }
  0x4f   : > { %262 = vmatprep.subr.mxu0 %v241_v5  ;;  %2251 = vmatprep.subr.mxu1 %v241_v5  ;;  %v228_v18 = vld [vmem:[#allocation5 + $0x70] sm:$0xff]  ;;  %v227_v19 = vld [vmem:[#allocation5 + $0x68] sm:$0xff]  ;;  %v226_v20 = vld [vmem:[#allocation5 + $0x60] sm:$0xff]  ;;  %p2535_p7 = pnand %p2534_p3, %p4174_p10  ;;  %s2539_s11 = scalar_lea.vmem %s2538_s10, 4096 }
  0x50   : > { %263 = vmatpush1.msra.mxu0 %v240_v6  ;;  %2267 = vmatpush1.msra.mxu1 %v240_v6  ;;  %v225_v21 = vld [vmem:[#allocation5 + $0x58] sm:$0xff]  ;;  %v224_v22 = vld [vmem:[#allocation5 + $0x50] sm:$0xff]  ;;  %v223_v23 = vld [vmem:[#allocation5 + $0x48] sm:$0xff]  ;;  %p2540_p12 = scmp.lt.s32.totalorder %s4083_s25, %s2538_s10  ;;  %p2541_p2 = scmp.lt.s32.totalorder %s2539_s11, %s2533_s8 }
  0x51   : > { %264 = vmatprep.subr.mxu0 %v239_v7  ;;  %2252 = vmatprep.subr.mxu1 %v239_v7  ;;  %v222_v24 = vld [vmem:[#allocation5 + $0x40] sm:$0xff]  ;;  %v221_v25 = vld [vmem:[#allocation5 + $0x38] sm:$0xff]  ;;  %v220_v26 = vld [vmem:[#allocation5 + $0x30] sm:$0xff]  ;;  %p2536_p11 = pneg %p2535_p7 }
  0x52   : > { %265 = vmatpush1.msra.mxu0 %v238_v8  ;;  %2268 = vmatpush1.msra.mxu1 %v238_v8  ;;  %v219_v27 = vld [vmem:[#allocation5 + $0x28] sm:$0xff]  ;;  %v218_v28 = vld [vmem:[#allocation5 + $0x20] sm:$0xff]  ;;  %v217_v29 = vld [vmem:[#allocation5 + $0x18] sm:$0xff]  ;;  %p2542_p13 = por %p2541_p2, %p2540_p12 }
  0x53   : > { %266 = vmatprep.subr.mxu0 %v237_v9  ;;  %2253 = vmatprep.subr.mxu1 %v237_v9  ;;  %v216_v30 = vld [vmem:[#allocation5 + $0x10] sm:$0xff]  ;;  %v215_v31 = vld [vmem:[#allocation5 + $0x8] sm:$0xff]  ;;  %v214_v32 = vld [vmem:[#allocation5] sm:$0xff] }
  0x54   : > { %267 = vmatpush1.msra.mxu0 %v236_v10  ;;  %2269 = vmatpush1.msra.mxu1 %v236_v10  ;;  %v206_v33 = vld [vmem:[%s2758_s29] sm:$0xff]  ;;  %v207_v35 = vld [vmem:[%s2758_s29 + $0x8] sm:$0xff]  ;;  %v208_v37 = vld [vmem:[%s2758_s29 + $0x10] sm:$0xff]  ;;  %p2543_p0 = pnand %p2542_p13, %p2536_p11 }
  0x55   : > { %268 = vmatprep.subr.mxu0 %v235_v11  ;;  %2254 = vmatprep.subr.mxu1 %v235_v11  ;;  %v210_v34 = vld [vmem:[%s2758_s29 + $0x20] sm:$0xff]  ;;  %v211_v36 = vld [vmem:[%s2758_s29 + $0x28] sm:$0xff]  ;;  %v212_v38 = vld [vmem:[%s2758_s29 + $0x30] sm:$0xff] }
  0x56   : > { %269 = vmatpush1.msra.mxu0 %v234_v12  ;;  %2270 = vmatpush1.msra.mxu1 %v234_v12  ;;  %v209_v39 = vld [vmem:[%s2758_s29 + $0x18] sm:$0xff]  ;;  %v246_v44 = vld [vmem:[%s4129_s2] sm:$0x3] }
  0x57   : > { %270 = vmatprep.subr.mxu0 %v233_v13  ;;  %2255 = vmatprep.subr.mxu1 %v233_v13  ;;  %v213_v40 = vld [vmem:[%s2758_s29 + $0x38] sm:$0xff]  ;;  %v2787_v46 = vrot.slane %v246_v44, %v250_v43  ;;  %v2789_v47 = vrot.slane %v246_v44, %v254_v45 }
  0x58   : > { %271 = vmatpush1.msra.mxu0 %v232_v14  ;;  %2271 = vmatpush1.msra.mxu1 %v232_v14 }
  0x59   : > { %272 = vmatprep.subr.mxu0 %v231_v15  ;;  %2256 = vmatprep.subr.mxu1 %v231_v15 }
  0x5a   : > { %273 = vmatpush1.msra.mxu0 %v230_v16  ;;  %2272 = vmatpush1.msra.mxu1 %v230_v16 }
  0x5b   : > { %274 = vmatprep.subr.mxu0 %v229_v17  ;;  %2257 = vmatprep.subr.mxu1 %v229_v17 }
  0x5c   : > { %275 = vmatpush1.msra.mxu0 %v228_v18  ;;  %2273 = vmatpush1.msra.mxu1 %v228_v18 }
  0x5d   : > { %276 = vmatprep.subr.mxu0 %v227_v19  ;;  %2258 = vmatprep.subr.mxu1 %v227_v19 }
  0x5e   : > { %277 = vmatpush1.msra.mxu0 %v226_v20  ;;  %2274 = vmatpush1.msra.mxu1 %v226_v20 }
  0x5f   : > { %278 = vmatprep.subr.mxu0 %v225_v21  ;;  %2259 = vmatprep.subr.mxu1 %v225_v21 }
  0x60   : > { %279 = vmatpush1.msra.mxu0 %v224_v22  ;;  %2275 = vmatpush1.msra.mxu1 %v224_v22 }
  0x61   : > { %280 = vmatprep.subr.mxu0 %v223_v23  ;;  %2260 = vmatprep.subr.mxu1 %v223_v23  ;;  %v2610_v23 = vmov 683565275  }
  0x62   : > { %281 = vmatpush1.msra.mxu0 %v222_v24  ;;  %2276 = vmatpush1.msra.mxu1 %v222_v24 }
  0x63   : > { %282 = vmatprep.subr.mxu0 %v221_v25  ;;  %2261 = vmatprep.subr.mxu1 %v221_v25 }
  0x64   : > { %283 = vmatpush1.msra.mxu0 %v220_v26  ;;  %2277 = vmatpush1.msra.mxu1 %v220_v26 }
  0x65   : > { %284 = vmatprep.subr.mxu0 %v219_v27  ;;  %2262 = vmatprep.subr.mxu1 %v219_v27  ;;  %v2611_v27 = vmov 2475754826  }
  0x66   : > { %285 = vmatpush1.msra.mxu0 %v218_v28  ;;  %2278 = vmatpush1.msra.mxu1 %v218_v28 }
  0x67   : > { %286 = vmatprep.subr.mxu0 %v217_v29  ;;  %2263 = vmatprep.subr.mxu1 %v217_v29  ;;  %v2612_v29 = vmov 2131351028  }
  0x68   : > { %287 = vmatpush1.msra.mxu0 %v216_v30  ;;  %2279 = vmatpush1.msra.mxu1 %v216_v30 }
  0x69   : > { %288 = vmatprep.subr.mxu0 %v215_v31  ;;  %2264 = vmatprep.subr.mxu1 %v215_v31  ;;  %v2613_v31 = vmov 2102212464  }
  0x6a   : > { %289 = vmatpush1.msra.mxu0 %v214_v32  ;;  %2280 = vmatpush1.msra.mxu1 %v214_v32 }
  0x6b   : > { %323 = vmatmul.mubr.f32.vlgmr.msra.gmra.mxu0 %v206_v33  ;;  %347 = vmatmul.mubr.f32.vlgmr.msra.gmra.mxu1 %v210_v34  ;;  %v2614_v33 = vmov 920167782  }
  0x6c   : > { %328 = vmatprep.mubr.f32.mxu0 %v2609_v0  ;;  %352 = vmatprep.mubr.f32.mxu1 %v2609_v0 }
  0x6f   : > { %329 = vmatmul.mubr.f32.gmra.mxu0 %v207_v35  ;;  %353 = vmatmul.mubr.f32.gmra.mxu1 %v211_v36 }
  0x70   : > { %334 = vmatprep.mubr.f32.mxu0 %v2609_v0  ;;  %358 = vmatprep.mubr.f32.mxu1 %v2609_v0 }
  0x73   : > { %335 = vmatmul.mubr.f32.gmra.mxu0 %v208_v37  ;;  %359 = vmatmul.mubr.f32.gmra.mxu1 %v212_v38 }
  0x74   : > { %340 = vmatprep.mubr.f32.mxu0 %v2609_v0  ;;  %364 = vmatprep.mubr.f32.mxu1 %v2609_v0 }
  0x77   : > { %341 = vmatmul.mubr.f32.gmra.mxu0 %v209_v39  ;;  %365 = vmatmul.mubr.f32.gmra.mxu1 %v213_v40  ;;  %v2615_v40 = vmov 1326507024  }
 0x12b   : > { %v324_v48 = vpop.f32.mrf.mxu0  ;;  %v348_v49 = vpop.f32.mrf.mxu1 }
 0x12c   : > { %v325_v50 = vadd.f32 %v324_v48, %v2787_v46  ;;  %v349_v51 = vadd.f32 %v348_v49, %v2787_v46 }
 0x12d   : > { %v326_v52 = vpop.f32.mrf.mxu0  ;;  %v350_v1 = vpop.f32.mrf.mxu1 }
 0x12e   : > { %v2793_v53 = vmul.f32 30.0, %v325_v50  ;;  %v2795_v54 = vmul.f32 30.0, %v349_v51  ;;  %v327_v55 = vadd.f32 %v326_v52, %v2789_v47  ;;  %v351_v7 = vadd.f32 %v350_v1, %v2789_v47 }
 0x130   : > { %v387_v56 = vand.u32 2147483647, %v2793_v53  ;;  %v390_v57 = vand.u32 2139095040, %v2793_v53  ;;  %v1219_v58 = vand.u32 2147483647, %v2795_v54  ;;  %v1222_v59 = vand.u32 2139095040, %v2795_v54 }
 0x131   : > { %v2804_v62 = vmul.f32 30.0, %v327_v55  ;;  %v2811_v17 = vmul.f32 30.0, %v351_v7  ;;  %vm389_vm13 = vcmp.lt.s32.totalorder %v2793_v53, 0 }
 0x132   : > { %v391_v60 = vshrl.u32 %v390_v57, 23  ;;  %v394_v61 = vand.u32 8388607, %v387_v56  ;;  %v1223_v63 = vshrl.u32 %v1222_v59, 23  ;;  %v1226_v0 = vand.u32 8388607, %v1219_v58 }
 0x133   : > { %v494_v4 = vand.u32 2139095040, %v2804_v62  ;;  %v491_v10 = vand.u32 2147483647, %v2804_v62  ;;  %vm2916_vm14 = vcmp.le.f32.partialorder %v387_v56, 0.7853982 }
 0x134   : > { %v2176_v2 = vadd.s32 4294967169, %v391_v60  ;;  %v2208_v3 = vadd.s32 4294967169, %v1223_v63  ;;  %v395_v5 = vor.u32 8388608, %v394_v61  ;;  %v1227_v8 = vor.u32 8388608, %v1226_v0 }
 0x135   : > { %v495_v11 = vshrl.u32 %v494_v4, 23  ;;  %v2821_v21 = vand.u32 8388607, %v491_v10 }
 0x136   : > { %v397_v6 = vadd.s32 1, %v2176_v2  ;;  %v1229_v9 = vadd.s32 1, %v2208_v3  ;;  %v2813_v18 = vshll.u32 %v395_v5, 8  ;;  %v2817_v20 = vshll.u32 %v1227_v8, 8 }
 0x137   : > { %v2180_v13 = vadd.s32 4294967169, %v495_v11 }
 0x138   : > { %vm398_vm0 = vcmp.gt.s32.totalorder %v397_v6, 0  ;;  %vm1230_vm1 = vcmp.gt.s32.totalorder %v1229_v9, 0 }
 0x139   : > { %v399_v12 = vsel %vm398_vm0, %v397_v6, 0  ;;  %v1231_v16 = vsel %vm1230_vm1, %v1229_v9, 0  ;;  %v2824_v26 = vadd.s32 1, %v2180_v13 }
 0x13a   : > { %v400_v14 = vshrl.u32 %v399_v12, 5  ;;  %v401_v15 = vand.u32 31, %v399_v12  ;;  %v2815_v19 = vshrl.u32 %v1231_v16, 5  ;;  %v1233_v25 = vand.u32 31, %v1231_v16 }
 0x13b   : > { %vm502_vm11 = vcmp.gt.s32.totalorder %v2824_v26, 0 }
 0x13c   : > { %v402_v22 = vsub.s32 32, %v401_v15  ;;  %v404_v24 = vshll.u32 %v2610_v23, %v401_v15  ;;  %v407_v28 = vshll.u32 %v2611_v27, %v401_v15  ;;  %v410_v30 = vshll.u32 %v2612_v29, %v401_v15 }
 0x13d   : > { %v413_v32 = vshll.u32 %v2613_v31, %v401_v15  ;;  %v416_v34 = vshll.u32 %v2614_v33, %v401_v15  ;;  %vm419_vm2 = vcmp.lt.s32.totalorder %v400_v14, 1  ;;  %vm420_vm3 = vcmp.lt.s32.totalorder %v400_v14, 2 }
 0x13e   : > { %v405_v35 = vshrl.u32 %v2611_v27, %v402_v22  ;;  %v408_v36 = vshrl.u32 %v2612_v29, %v402_v22  ;;  %v411_v37 = vshrl.u32 %v2613_v31, %v402_v22  ;;  %v403_v38 = vshrl.u32 %v2610_v23, %v402_v22 }
 0x13f   : > { %v414_v39 = vshrl.u32 %v2614_v33, %v402_v22  ;;  %v417_v41 = vshrl.u32 %v2615_v40, %v402_v22  ;;  %v1234_v45 = vsub.s32 32, %v1233_v25  ;;  %vm421_vm4 = vcmp.lt.s32.totalorder %v400_v14, 3 }
 0x140   : > { %v406_v42 = vor.u32 %v405_v35, %v404_v24  ;;  %v409_v43 = vor.u32 %v408_v36, %v407_v28  ;;  %v412_v44 = vor.u32 %v411_v37, %v410_v30  ;;  %vm422_vm5 = vcmp.lt.s32.totalorder %v400_v14, 4 }
 0x141   : > { %v415_v48 = vor.u32 %v414_v39, %v413_v32  ;;  %v418_v49 = vor.u32 %v417_v41, %v416_v34  ;;  %v1236_v61 = vshll.u32 %v2610_v23, %v1233_v25  ;;  %v1237_v1 = vshrl.u32 %v2611_v27, %v1234_v45 }
 0x142   : > { %v423_v50 = vsel %vm419_vm2, %v403_v38, %v406_v42  ;;  %v424_v51 = vsel %vm422_vm5, %v412_v44, 2102212464  ;;  %v427_v52 = vsel %vm419_vm2, %v406_v42, %v409_v43  ;;  %v431_v55 = vsel %vm419_vm2, %v409_v43, %v412_v44 }
 0x143   : > { %v425_v57 = vsel %vm421_vm4, %v409_v43, %v424_v51  ;;  %v428_v59 = vsel %vm422_vm5, %v415_v48, 920167782  ;;  %v432_v60 = vsel %vm422_vm5, %v418_v49, 1326507024  ;;  %v1239_v2 = vshll.u32 %v2611_v27, %v1233_v25 }
 0x144   : > { %v429_v63 = vsel %vm421_vm4, %v412_v44, %v428_v59  ;;  %v433_v0 = vsel %vm421_vm4, %v415_v48, %v432_v60  ;;  %v426_v3 = vsel %vm420_vm3, %v423_v50, %v425_v57  ;;  %v1240_v6 = vshrl.u32 %v2612_v29, %v1234_v45 }
 0x145   : > { %v430_v4 = vsel %vm420_vm3, %v427_v52, %v429_v63  ;;  %v434_v5 = vsel %vm420_vm3, %v431_v55, %v433_v0  ;;  %v1238_v12 = vor.u32 %v1237_v1, %v1236_v61  ;;  %v1242_v15 = vshll.u32 %v2612_v29, %v1233_v25 }
 0x146   : > { %v2847_v7 = vmul.u32.u64.low %v2813_v18, %v434_v5  ;;  %v2848_v8 = vmul.u32.u64.high %v2813_v18, %v434_v5, %v2847_v7  ;;  %v2851_v9 = vmul.u32.u64.low %v2813_v18, %v430_v4  ;;  %v2852_v11 = vmul.u32.u64.high %v2813_v18, %v430_v4, %v2851_v9 }
 0x147   : > { %v1241_v13 = vor.u32 %v1240_v6, %v1239_v2  ;;  %v1243_v16 = vshrl.u32 %v2613_v31, %v1234_v45  ;;  %v1235_v22 = vshrl.u32 %v2610_v23, %v1234_v45  ;;  %v1245_v14 = vshll.u32 %v2613_v31, %v1233_v25 }
 0x148   : > { %v1246_v24 = vshrl.u32 %v2614_v33, %v1234_v45  ;;  %v1249_v28 = vshrl.u32 %v2615_v40, %v1234_v45  ;;  %v442_v30 = vmul.u32 %v2813_v18, %v426_v3  ;;  %v1248_v34 = vshll.u32 %v2614_v33, %v1233_v25 }
 0x149   : > { %v1244_v32 = vor.u32 %v1243_v16, %v1242_v15  ;;  %vm1251_vm6 = vcmp.lt.s32.totalorder %v2815_v19, 1  ;;  %vm444_vm7 = vc.u32 %v2848_v8, %v2851_v9  ;;  %v445_v35 = vadd.s32 1, %v2852_v11 }
 0x14a   : > { %v1247_v36 = vor.u32 %v1246_v24, %v1245_v14  ;;  %vm1252_vm8 = vcmp.lt.s32.totalorder %v2815_v19, 2  ;;  %v1250_v37 = vor.u32 %v1249_v28, %v1248_v34  ;;  %vm1253_vm9 = vcmp.lt.s32.totalorder %v2815_v19, 3 }
 0x14b   : > { %vm1254_vm10 = vcmp.lt.s32.totalorder %v2815_v19, 4  ;;  %v1259_v38 = vsel %vm1251_vm6, %v1238_v12, %v1241_v13  ;;  %v446_v18 = vsel %vm444_vm7, %v445_v35, %v2852_v11  ;;  %v1263_v25 = vsel %vm1251_vm6, %v1241_v13, %v1244_v32 }
 0x14c   : > { %v1256_v39 = vsel %vm1254_vm10, %v1244_v32, 2102212464  ;;  %v1260_v41 = vsel %vm1254_vm10, %v1247_v36, 920167782  ;;  %v447_v42 = vadd.s32 %v446_v18, %v442_v30  ;;  %v1255_v43 = vsel %vm1251_vm6, %v1235_v22, %v1238_v12 }
 0x14d   : > { %v1261_v44 = vsel %vm1253_vm9, %v1244_v32, %v1260_v41  ;;  %v1264_v45 = vsel %vm1254_vm10, %v1250_v37, 1326507024  ;;  %v1257_v48 = vsel %vm1253_vm9, %v1241_v13, %v1256_v39  ;;  %v503_v61 = vsel %vm502_vm11, %v2824_v26, 0 }
 0x14e   : > { %v1262_v49 = vsel %vm1252_vm8, %v1259_v38, %v1261_v44  ;;  %v1265_v50 = vsel %vm1253_vm9, %v1247_v36, %v1264_v45  ;;  %v448_v51 = vadd.s32 536870912, %v447_v42  ;;  %v1258_v0 = vsel %vm1252_vm8, %v1255_v43, %v1257_v48 }
 0x14f   : > { %v1266_v52 = vsel %vm1252_vm8, %v1263_v25, %v1265_v50  ;;  %v2875_v55 = vmul.u32.u64.low %v2817_v20, %v1262_v49  ;;  %v2876_v57 = vmul.u32.u64.high %v2817_v20, %v1262_v49, %v2875_v55  ;;  %v505_v1 = vand.u32 31, %v503_v61 }
 0x150   : > { %v2880_v59 = vmul.u32.u64.low %v2817_v20, %v1266_v52  ;;  %v2881_v60 = vmul.u32.u64.high %v2817_v20, %v1266_v52, %v2880_v59  ;;  %v449_v63 = vshrl.u32 %v448_v51, 30  ;;  %v1326_v2 = vand.u32 2139095040, %v2811_v17 }
 0x151   : > { %v1277_v4 = vadd.s32 1, %v2876_v57  ;;  %v499_v5 = vor.u32 8388608, %v2821_v21  ;;  %v1274_v6 = vmul.u32 %v2817_v20, %v1258_v0  ;;  %v506_v7 = vsub.s32 32, %v505_v1 }
 0x152   : > { %v450_v3 = vshll.u32 %v449_v63, 30  ;;  %vm1276_vm12 = vc.u32 %v2881_v60, %v2875_v55  ;;  %v1327_v19 = vshrl.u32 %v1326_v2, 23  ;;  %v443_v13 = vadd.s32 %v2851_v9, %v2848_v8 }
 0x153   : > { %v1278_v26 = vsel %vm1276_vm12, %v1277_v4, %v2876_v57  ;;  %v2898_v16 = vshll.u32 %v499_v5, 8  ;;  %v1323_v20 = vand.u32 2147483647, %v2811_v17  ;;  %v2901_v22 = vshrl.u32 %v503_v61, 5 }
 0x154   : > { %v2892_v11 = vsub.s32 %v447_v42, %v450_v3  ;;  %v1279_v12 = vadd.s32 %v1278_v26, %v1274_v6  ;;  %v509_v14 = vshrl.u32 %v2611_v27, %v506_v7  ;;  %v512_v24 = vshrl.u32 %v2612_v29, %v506_v7 }
 0x155   : > { %v515_v30 = vshrl.u32 %v2613_v31, %v506_v7  ;;  %v518_v32 = vshrl.u32 %v2614_v33, %v506_v7  ;;  %v2908_v8 = vadd.s32 4294967169, %v1327_v19  ;;  %v473_v9 = vsub.s32 4, %v449_v63 }
 0x156   : > { %v453_v15 = vsub.s32 0, %v2892_v11  ;;  %v1280_v21 = vadd.s32 536870912, %v1279_v12  ;;  %v508_v35 = vshll.u32 %v2610_v23, %v505_v1  ;;  %v511_v36 = vshll.u32 %v2611_v27, %v505_v1 }
 0x157   : > { %v514_v18 = vshll.u32 %v2612_v29, %v505_v1  ;;  %v517_v39 = vshll.u32 %v2613_v31, %v505_v1  ;;  %v521_v41 = vshrl.u32 %v2615_v40, %v506_v7  ;;  %v2926_v44 = vand.u32 8388607, %v1323_v20 }
 0x158   : > { %v2177_v28 = vmin.u32 %v453_v15, %v2892_v11  ;;  %v2910_v34 = vshrl.u32 %v1280_v21, 30  ;;  %v510_v42 = vor.u32 %v509_v14, %v508_v35  ;;  %v513_v43 = vor.u32 %v512_v24, %v511_v36 }
 0x159   : > { %v516_v56 = vor.u32 %v515_v30, %v514_v18  ;;  %v519_v48 = vor.u32 %v518_v32, %v517_v39  ;;  %v520_v49 = vshll.u32 %v2614_v33, %v505_v1  ;;  %v474_v50 = vsel %vm389_vm13, %v473_v9, %v449_v63 }
 0x15a   : > { %v455_v38 = vclz %v2177_v28  ;;  %v1282_v25 = vshll.u32 %v2910_v34, 30  ;;  %v507_v52 = vshrl.u32 %v2610_v23, %v506_v7  ;;  %vm523_vm15 = vcmp.lt.s32.totalorder %v2901_v22, 1 }
 0x15b   : > { %v522_v57 = vor.u32 %v521_v41, %v520_v49  ;;  %vm524_vm1 = vcmp.lt.s32.totalorder %v2901_v22, 2  ;;  %vm525_vm2 = vcmp.lt.s32.totalorder %v2901_v22, 3  ;;  %vm1221_vm3 = vcmp.lt.s32.totalorder %v2795_v54, 0 }
 0x15c   : > { %v2178_v45 = vadd.s32 4294967294, %v455_v38  ;;  %v2931_v51 = vsub.s32 %v1279_v12, %v1282_v25  ;;  %vm526_vm4 = vcmp.lt.s32.totalorder %v2901_v22, 4  ;;  %v531_v63 = vsel %vm523_vm15, %v510_v42, %v513_v43 }
 0x15d   : > { %v528_v2 = vsel %vm526_vm4, %v516_v56, 2102212464  ;;  %v532_v3 = vsel %vm526_vm4, %v519_v48, 920167782  ;;  %v535_v7 = vsel %vm523_vm15, %v513_v43, %v516_v56  ;;  %v536_v15 = vsel %vm526_vm4, %v522_v57, 1326507024 }
 0x15e   : > { %vm2179_vm0 = vcmp.lt.s32.totalorder %v2178_v45, 0  ;;  %v1285_v61 = vsub.s32 0, %v2931_v51  ;;  %v533_v6 = vsel %vm525_vm2, %v516_v56, %v532_v3  ;;  %v476_v21 = vsel %vm2916_vm14, 0, %v474_v50 }
 0x15f   : > { %v458_v59 = vsel %vm2179_vm0, 0, %v2178_v45  ;;  %v534_v12 = vsel %vm524_vm1, %v531_v63, %v533_v6  ;;  %vm2954_vm5 = vcmp.le.f32.partialorder %v1219_v58, 0.7853982  ;;  %v527_v24 = vsel %vm523_vm15, %v507_v52, %v510_v42 }
 0x160   : > { %v459_v0 = vsub.s32 32, %v458_v59  ;;  %v463_v1 = vsub.s32 4294967266, %v458_v59  ;;  %v460_v4 = vshll.u32 %v2892_v11, %v458_v59  ;;  %v2209_v5 = vmin.u32 %v1285_v61, %v2931_v51 }
 0x161   : > { %v1305_v32 = vsub.s32 4, %v2910_v34  ;;  %v537_v9 = vsel %vm525_vm2, %v519_v48, %v536_v15  ;;  %v2968_v36 = vmul.u32.u64.low %v2898_v16, %v534_v12  ;;  %v2969_v38 = vmul.u32.u64.high %v2898_v16, %v534_v12, %v2968_v36 }
 0x162   : > { %v461_v26 = vshrl.u32 %v443_v13, %v459_v0  ;;  %v464_v19 = vadd.s32 127, %v463_v1  ;;  %v1287_v14 = vclz %v2209_v5  ;;  %v529_v13 = vsel %vm525_vm2, %v513_v43, %v528_v2  ;;  %v330_v1 = vpop.f32.mrf.mxu0 }
 0x163   : > { %v538_v58 = vsel %vm524_vm1, %v535_v7, %v537_v9  ;;  %v530_v39 = vsel %vm524_vm1, %v527_v24, %v529_v13  ;;  %v480_v42 = vadd.s32 3, %v476_v21  ;;  %v1275_v43 = vadd.s32 %v2875_v55, %v2881_v60  ;;  %v354_v9 = vpop.f32.mrf.mxu1 }
 0x164   : > { %v462_v28 = vor.u32 %v461_v26, %v460_v4  ;;  %v465_v30 = vshll.u32 %v464_v19, 23  ;;  %v2210_v35 = vadd.s32 4294967294, %v1287_v14  ;;  %v1333_v45 = vadd.s32 1, %v2908_v8 }
 0x165   : > { %v2975_v41 = vmul.u32.u64.low %v2898_v16, %v538_v58  ;;  %v2976_v25 = vmul.u32.u64.high %v2898_v16, %v538_v58, %v2975_v41  ;;  %v1306_v50 = vsel %vm1221_vm3, %v1305_v32, %v2910_v34  ;;  %v546_v57 = vmul.u32 %v2898_v16, %v530_v39 }
 0x166   : > { %v466_v18 = vor.u32 4788187, %v465_v30  ;;  %vm2211_vm6 = vcmp.lt.s32.totalorder %v2210_v35, 0  ;;  %v469_v48 = vcvt.s32.f32 %v462_v28  ;;  %v549_v59 = vadd.s32 1, %v2969_v38 }
 0x167   : > { %v1290_v49 = vsel %vm2211_vm6, 0, %v2210_v35  ;;  %vm548_vm7 = vc.u32 %v2976_v25, %v2968_v36  ;;  %vm1334_vm8 = vcmp.gt.s32.totalorder %v1333_v45, 0  ;;  %v1308_v2 = vsel %vm2954_vm5, 0, %v1306_v50 }
 0x168   : > { %v467_v56 = vand.u32 2147483647, %v466_v18  ;;  %v1291_v22 = vsub.s32 32, %v1290_v49  ;;  %v1295_v52 = vsub.s32 4294967266, %v1290_v49  ;;  %v1292_v63 = vshll.u32 %v2931_v51, %v1290_v49 }
 0x169   : > { %v550_v8 = vsel %vm548_vm7, %v549_v59, %v2969_v38  ;;  %v1335_v0 = vsel %vm1334_vm8, %v1333_v45, 0  ;;  %v331_v26 = vadd.f32 %v330_v1, %v2787_v46  ;;  %v2998_v12 = vand.u32 3, %v480_v42 }
 0x16a   : > { %v470_v61 = vmul.f32 %v469_v48, %v467_v56  ;;  %v1293_v55 = vshrl.u32 %v1275_v43, %v1291_v22  ;;  %v1296_v60 = vadd.s32 127, %v1295_v52  ;;  %v551_v16 = vadd.s32 %v550_v8, %v546_v57 }
 0x16b   : > { %v1337_v3 = vand.u32 31, %v1335_v0  ;;  %v1312_v21 = vadd.s32 3, %v1308_v2  ;;  %v1331_v24 = vor.u32 8388608, %v2926_v44  ;;  %v3006_v35 = vshrl.u32 %v1335_v0, 5 }
 0x16c   : > { %v471_v34 = vxor.u32 2147483648, %v470_v61  ;;  %v1294_v4 = vor.u32 %v1293_v55, %v1292_v63  ;;  %v1297_v5 = vshll.u32 %v1296_v60, 23  ;;  %v552_v6 = vadd.s32 536870912, %v551_v16 }
 0x16d   : > { %v1338_v7 = vsub.s32 32, %v1337_v3  ;;  %v1340_v58 = vshll.u32 %v2610_v23, %v1337_v3  ;;  %v1343_v39 = vshll.u32 %v2611_v27, %v1337_v3  ;;  %v1349_v44 = vshll.u32 %v2613_v31, %v1337_v3 }
 0x16e   : > { %v472_v51 = vsel %vm389_vm13, %v471_v34, %v470_v61  ;;  %v1298_v15 = vor.u32 4788187, %v1297_v5  ;;  %v3000_v14 = vshrl.u32 %v552_v6, 30  ;;  %v1301_v30 = vcvt.s32.f32 %v1294_v4 }
 0x16f   : > { %v475_v19 = vsel %vm2916_vm14, %v2793_v53, %v472_v51  ;;  %v1341_v13 = vshrl.u32 %v2611_v27, %v1338_v7  ;;  %v1344_v32 = vshrl.u32 %v2612_v29, %v1338_v7  ;;  %v1347_v38 = vshrl.u32 %v2613_v31, %v1338_v7 }
 0x170   : > { %2415 = vcosq.f32 %v475_v19  ;;  %v1299_v28 = vand.u32 2147483647, %v1298_v15  ;;  %v554_v37 = vshll.u32 %v3000_v14, 30  ;;  %v1350_v41 = vshrl.u32 %v2614_v33, %v1338_v7 }
 0x171   : > { %2417 = vsinq.f32 %v475_v19  ;;  %v1342_v43 = vor.u32 %v1341_v13, %v1340_v58  ;;  %v1346_v45 = vshll.u32 %v2612_v29, %v1337_v3  ;;  %v3017_v56 = vadd.f32 %v354_v9, %v2787_v46 }
 0x172   : > { %v1302_v18 = vmul.f32 %v1301_v30, %v1299_v28  ;;  %v3013_v42 = vsub.s32 %v551_v16, %v554_v37  ;;  %v1345_v49 = vor.u32 %v1344_v32, %v1343_v39  ;;  %v1351_v50 = vor.u32 %v1350_v41, %v1349_v44 }
 0x173   : > { %v1353_v22 = vshrl.u32 %v2615_v40, %v1338_v7  ;;  %v3020_v52 = vand.u32 3, %v1312_v21  ;;  %v1348_v59 = vor.u32 %v1347_v38, %v1346_v45  ;;  %v1352_v61 = vshll.u32 %v2614_v33, %v1337_v3 }
 0x174   : > { %v1303_v48 = vxor.u32 2147483648, %v1302_v18  ;;  %v557_v57 = vsub.s32 0, %v3013_v42  ;;  %vm486_vm9 = vcmp.eq.s32.totalorder %v2998_v12, 2  ;;  %vm1355_vm10 = vcmp.lt.s32.totalorder %v3006_v35, 1 }
 0x175   : > { %v3028_v55 = vshll.u32 %v1331_v24, 8  ;;  %v3030_v60 = vmul.f32 30.0, %v331_v26  ;;  %vm483_vm11 = vcmp.eq.s32.totalorder %v2998_v12, 0  ;;  %vm493_vm12 = vcmp.lt.s32.totalorder %v2804_v62, 0 }
 0x176   : > { %v1304_v63 = vsel %vm1221_vm3, %v1303_v48, %v1302_v18  ;;  %v2181_v0 = vmin.u32 %v557_v57, %v3013_v42  ;;  %v1354_v1 = vor.u32 %v1353_v22, %v1352_v61  ;;  %vm1358_vm13 = vcmp.lt.s32.totalorder %v3006_v35, 4 }
 0x177   : > { %v1307_v8 = vsel %vm2954_vm5, %v2795_v54, %v1304_v63  ;;  %vm482_vm14 = vcmp.lt.s32.totalorder %v2998_v12, 2  ;;  %v1339_v34 = vshrl.u32 %v2610_v23, %v1338_v7  ;;  %v1363_v2 = vsel %vm1355_vm10, %v1342_v43, %v1345_v49 }
 0x178   : > { %2419 = vcosq.f32 %v1307_v8  ;;  %v1364_v16 = vsel %vm1358_vm13, %v1351_v50, 920167782  ;;  %vm479_vm15 = vweird.f32 %v2793_v53  ;;  %v559_v11 = vclz %v2181_v0 }
 0x179   : > { %2421 = vsinq.f32 %v1307_v8  ;;  %vm1357_vm0 = vcmp.lt.s32.totalorder %v3006_v35, 3  ;;  %v1360_v3 = vsel %vm1358_vm13, %v1348_v59, 2102212464  ;;  %v577_v4 = vsub.s32 4, %v3000_v14 }
 0x17a   : > { %vm1356_vm1 = vcmp.lt.s32.totalorder %v3006_v35, 2  ;;  %v1365_v5 = vsel %vm1357_vm0, %v1348_v59, %v1364_v16  ;;  %v1367_v51 = vsel %vm1355_vm10, %v1345_v49, %v1348_v59  ;;  %v2182_v6 = vadd.s32 4294967294, %v559_v11 }
 0x17b   : > { %v1359_v7 = vsel %vm1355_vm10, %v1339_v34, %v1342_v43  ;;  %v1366_v26 = vsel %vm1356_vm1, %v1363_v2, %v1365_v5  ;;  %v1368_v19 = vsel %vm1358_vm13, %v1354_v1, 1326507024  ;;  %v1361_v21 = vsel %vm1357_vm0, %v1345_v49, %v1360_v3 }
 0x17c   : > { %v1369_v24 = vsel %vm1357_vm0, %v1351_v50, %v1368_v19  ;;  %v3060_v13 = vmul.u32.u64.low %v3028_v55, %v1366_v26  ;;  %v3061_v28 = vmul.u32.u64.high %v3028_v55, %v1366_v26, %v3060_v13  ;;  %v547_v9 = vadd.s32 %v2968_v36, %v2976_v25 }
 0x17d   : > { %v2416_v15 = vpop.eup %2415  ;;  %vm2183_vm2 = vcmp.lt.s32.totalorder %v2182_v6, 0  ;;  %v1370_v37 = vsel %vm1356_vm1, %v1367_v51, %v1369_v24  ;;  %v1362_v45 = vsel %vm1356_vm1, %v1359_v7, %v1361_v21  ;;  %v578_v25 = vsel %vm493_vm12, %v577_v4, %v3000_v14 }
 0x17e   : > { %v2418_v30 = vpop.eup %2417  ;;  %v487_v32 = vxor.u32 2147483648, %v2416_v15  ;;  %v562_v38 = vsel %vm2183_vm2, 0, %v2182_v6  ;;  %v3070_v18 = vmul.u32.u64.low %v3028_v55, %v1370_v37  ;;  %v3071_v39 = vmul.u32.u64.high %v3028_v55, %v1370_v37, %v3070_v18 }
 0x17f   : > { %v484_v58 = vxor.u32 2147483648, %v2418_v30  ;;  %v563_v41 = vsub.s32 32, %v562_v38  ;;  %v567_v43 = vsub.s32 4294967266, %v562_v38  ;;  %v1381_v48 = vadd.s32 1, %v3061_v28 }
 0x180   : > { %v488_v44 = vsel %vm486_vm9, %v487_v32, %v2418_v30  ;;  %v598_v49 = vand.u32 2139095040, %v3030_v60  ;;  %v564_v22 = vshll.u32 %v3013_v42, %v562_v38  ;;  %v1378_v61 = vmul.u32 %v3028_v55, %v1362_v45 }
 0x181   : > { %v485_v36 = vsel %vm483_vm11, %v2416_v15, %v484_v58  ;;  %v565_v57 = vshrl.u32 %v547_v9, %v563_v41  ;;  %v568_v59 = vadd.s32 127, %v567_v43  ;;  %vm1380_vm3 = vc.u32 %v3071_v39, %v3060_v13 }
 0x182   : > { %v489_v50 = vsel %vm482_vm14, %v485_v36, %v488_v44  ;;  %v599_v14 = vshrl.u32 %v598_v49, 23  ;;  %v1382_v8 = vsel %vm1380_vm3, %v1381_v48, %v3061_v28  ;;  %vm1314_vm4 = vcmp.lt.s32.totalorder %v3020_v52, 2  ;;  %v332_v28 = vpop.f32.mrf.mxu0 }
 0x183   : > { %v490_v35 = vsel %vm479_vm15, nan, %v489_v50  ;;  %v566_v63 = vor.u32 %v565_v57, %v564_v22  ;;  %v569_v12 = vshll.u32 %v568_v59, 23  ;;  %vm3099_vm5 = vcmp.le.f32.partialorder %v491_v10, 0.7853982 }
 0x184   : > { %2051 = vst [vmem:[%s3092_s22] sm:$0xff] %v490_v35  ;;  %v1383_v42 = vadd.s32 %v1382_v8, %v1378_v61  ;;  %v2184_v55 = vadd.s32 4294967169, %v599_v14  ;;  %vm1315_vm6 = vcmp.eq.s32.totalorder %v3020_v52, 0  ;;  %v580_v34 = vsel %vm3099_vm5, 0, %v578_v25 }
 0x185   : > { %v2420_v0 = vpop.eup %2419  ;;  %v570_v1 = vor.u32 4788187, %v569_v12  ;;  %v595_v2 = vand.u32 2147483647, %v3030_v60  ;;  %v3108_v10 = vmul.f32 30.0, %v3017_v56  ;;  %vm1318_vm7 = vcmp.eq.s32.totalorder %v3020_v52, 2 }
 0x186   : > { %v2422_v16 = vpop.eup %2421  ;;  %v1319_v11 = vxor.u32 2147483648, %v2420_v0  ;;  %v1384_v3 = vadd.s32 536870912, %v1383_v42  ;;  %v605_v4 = vadd.s32 1, %v2184_v55  ;;  %v573_v6 = vcvt.s32.f32 %v566_v63 }
 0x187   : > { %v1316_v5 = vxor.u32 2147483648, %v2422_v16  ;;  %v571_v51 = vand.u32 2147483647, %v570_v1  ;;  %v584_v26 = vadd.s32 3, %v580_v34  ;;  %v602_v24 = vand.u32 8388607, %v595_v2 }
 0x188   : > { %v1320_v7 = vsel %vm1318_vm7, %v1319_v11, %v2422_v16  ;;  %v3111_v19 = vshrl.u32 %v1384_v3, 30  ;;  %vm606_vm8 = vcmp.gt.s32.totalorder %v605_v4, 0  ;;  %vm1311_vm9 = vweird.f32 %v2795_v54 }
 0x189   : > { %v1317_v15 = vsel %vm1315_vm6, %v2420_v0, %v1316_v5  ;;  %v574_v21 = vmul.f32 %v573_v6, %v571_v51  ;;  %v607_v56 = vsel %vm606_vm8, %v605_v4, 0  ;;  %v1430_v9 = vand.u32 2139095040, %v3108_v10 }
 0x18a   : > { %v1321_v30 = vsel %vm1314_vm4, %v1317_v15, %v1320_v7  ;;  %v1386_v32 = vshll.u32 %v3111_v19, 30  ;;  %v609_v38 = vand.u32 31, %v607_v56  ;;  %v3123_v18 = vand.u32 3, %v584_v26 }
 0x18b   : > { %v1322_v37 = vsel %vm1311_vm9, nan, %v1321_v30  ;;  %v575_v58 = vxor.u32 2147483648, %v574_v21  ;;  %v3128_v41 = vadd.f32 %v332_v28, %v2789_v47  ;;  %v1379_v52 = vadd.s32 %v3060_v13, %v3071_v39 }
 0x18c   : > { %2059 = vst [vmem:[%s3092_s22 + $0x40] sm:$0xff] %v1322_v37  ;;  %v3125_v44 = vsub.s32 %v1383_v42, %v1386_v32  ;;  %v603_v43 = vor.u32 8388608, %v602_v24  ;;  %v610_v45 = vsub.s32 32, %v609_v38  ;;  %v1427_v48 = vand.u32 2147483647, %v3108_v10 }
 0x18d   : > { %v576_v54 = vsel %vm493_vm12, %v575_v58, %v574_v21  ;;  %v1431_v49 = vshrl.u32 %v1430_v9, 23  ;;  %v608_v50 = vshrl.u32 %v607_v56, 5  ;;  %v612_v39 = vshll.u32 %v2610_v23, %v609_v38 }
 0x18e   : > { %v579_v36 = vsel %vm3099_vm5, %v2804_v62, %v576_v54  ;;  %v1389_v25 = vsub.s32 0, %v3125_v44  ;;  %v613_v22 = vshrl.u32 %v2611_v27, %v610_v45  ;;  %v616_v57 = vshrl.u32 %v2612_v29, %v610_v45 }
 0x18f   : > { %2423 = vcosq.f32 %v579_v36  ;;  %v615_v59 = vshll.u32 %v2611_v27, %v609_v38  ;;  %v1409_v35 = vsub.s32 4, %v3111_v19  ;;  %v618_v61 = vshll.u32 %v2612_v29, %v609_v38 }
 0x190   : > { %2425 = vsinq.f32 %v579_v36  ;;  %v2213_v13 = vmin.u32 %v1389_v25, %v3125_v44  ;;  %v619_v14 = vshrl.u32 %v2613_v31, %v610_v45  ;;  %v3147_v63 = vshll.u32 %v603_v43, 8 }
 0x191   : > { %v614_v8 = vor.u32 %v613_v22, %v612_v39  ;;  %v617_v53 = vor.u32 %v616_v57, %v615_v59  ;;  %v621_v42 = vshll.u32 %v2613_v31, %v609_v38  ;;  %v622_v0 = vshrl.u32 %v2614_v33, %v610_v45 }
 0x192   : > { %v1391_v12 = vclz %v2213_v13  ;;  %v620_v55 = vor.u32 %v619_v14, %v618_v61  ;;  %v624_v1 = vshll.u32 %v2614_v33, %v609_v38  ;;  %v625_v34 = vshrl.u32 %v2615_v40, %v610_v45 }
 0x193   : > { %vm627_vm10 = vcmp.lt.s32.totalorder %v608_v50, 1  ;;  %vm628_vm11 = vcmp.lt.s32.totalorder %v608_v50, 2  ;;  %v2216_v11 = vadd.s32 4294967169, %v1431_v49  ;;  %vm1325_vm12 = vcmp.lt.s32.totalorder %v2811_v17, 0 }
 0x194   : > { %v2214_v16 = vadd.s32 4294967294, %v1391_v12  ;;  %v611_v3 = vshrl.u32 %v2610_v23, %v610_v45  ;;  %v623_v4 = vor.u32 %v622_v0, %v621_v42  ;;  %v626_v5 = vor.u32 %v625_v34, %v624_v1 }
 0x195   : > { %vm630_vm13 = vcmp.lt.s32.totalorder %v608_v50, 4  ;;  %vm629_vm15 = vcmp.lt.s32.totalorder %v608_v50, 3  ;;  %v635_v6 = vsel %vm627_vm10, %v614_v8, %v617_v53  ;;  %v639_v15 = vsel %vm627_vm10, %v617_v53, %v620_v55 }
 0x196   : > { %vm2215_vm14 = vcmp.lt.s32.totalorder %v2214_v16, 0  ;;  %v632_v51 = vsel %vm630_vm13, %v620_v55, 2102212464  ;;  %v636_v26 = vsel %vm630_vm13, %v623_v4, 920167782  ;;  %vm586_vm0 = vcmp.lt.s32.totalorder %v3123_v18, 2 }
 0x197   : > { %v1394_v7 = vsel %vm2215_vm14, 0, %v2214_v16  ;;  %v640_v21 = vsel %vm630_vm13, %v626_v5, 1326507024  ;;  %vm3160_vm1 = vcmp.le.f32.partialorder %v1323_v20, 0.7853982  ;;  %v631_v30 = vsel %vm627_vm10, %v611_v3, %v614_v8 }
 0x198   : > { %v1395_v56 = vsub.s32 32, %v1394_v7  ;;  %v1399_v28 = vsub.s32 4294967266, %v1394_v7  ;;  %v637_v32 = vsel %vm629_vm15, %v620_v55, %v636_v26  ;;  %vm583_vm2 = vweird.f32 %v2804_v62 }
 0x199   : > { %v633_v9 = vsel %vm629_vm15, %v617_v53, %v632_v51  ;;  %v638_v37 = vsel %vm628_vm11, %v635_v6, %v637_v32  ;;  %v641_v58 = vsel %vm629_vm15, %v623_v4, %v640_v21  ;;  %v1437_v38 = vadd.s32 1, %v2216_v11 }
 0x19a   : > { %v1396_v20 = vshll.u32 %v3125_v44, %v1394_v7  ;;  %v1397_v54 = vshrl.u32 %v1379_v52, %v1395_v56  ;;  %v1400_v43 = vadd.s32 127, %v1399_v28  ;;  %v642_v45 = vsel %vm628_vm11, %v639_v15, %v641_v58 }
 0x19b   : > { %v3173_v36 = vmul.u32.u64.low %v3147_v63, %v642_v45  ;;  %v3174_v25 = vmul.u32.u64.high %v3147_v63, %v642_v45, %v3173_v36  ;;  %v3177_v49 = vmul.u32.u64.low %v3147_v63, %v638_v37  ;;  %v3178_v22 = vmul.u32.u64.high %v3147_v63, %v638_v37, %v3177_v49 }
 0x19c   : > { %v2424_v57 = vpop.eup %2423  ;;  %v1398_v13 = vor.u32 %v1397_v54, %v1396_v20  ;;  %v1401_v39 = vshll.u32 %v1400_v43, 23  ;;  %v634_v59 = vsel %vm628_vm11, %v631_v30, %v633_v9  ;;  %vm1438_vm3 = vcmp.gt.s32.totalorder %v1437_v38, 0 }
 0x19d   : > { %v2426_v44 = vpop.eup %2425  ;;  %vm587_vm4 = vcmp.eq.s32.totalorder %v3123_v18, 0  ;;  %v591_v52 = vxor.u32 2147483648, %v2424_v57  ;;  %v1434_v61 = vand.u32 8388607, %v1427_v48  ;;  %v1439_v14 = vsel %vm1438_vm3, %v1437_v38, 0 }
 0x19e   : > { %v588_v12 = vxor.u32 2147483648, %v2426_v44  ;;  %vm590_vm5 = vcmp.eq.s32.totalorder %v3123_v18, 2  ;;  %v1402_v8 = vor.u32 4788187, %v1401_v39  ;;  %v1410_v53 = vsel %vm1325_vm12, %v1409_v35, %v3111_v19 }
 0x19f   : > { %v592_v42 = vsel %vm590_vm5, %v591_v52, %v2426_v44  ;;  %v650_v50 = vmul.u32 %v3147_v63, %v634_v59  ;;  %vm652_vm6 = vc.u32 %v3174_v25, %v3177_v49  ;;  %v653_v55 = vadd.s32 1, %v3178_v22 }
 0x1a0   : > { %v589_v0 = vsel %vm587_vm4, %v2424_v57, %v588_v12  ;;  %v1403_v1 = vand.u32 2147483647, %v1402_v8  ;;  %v1405_v34 = vcvt.s32.f32 %v1398_v13  ;;  %v1441_v16 = vand.u32 31, %v1439_v14 }
 0x1a1   : > { %v593_v11 = vsel %vm586_vm0, %v589_v0, %v592_v42  ;;  %v1412_v3 = vsel %vm3160_vm1, 0, %v1410_v53  ;;  %v654_v19 = vsel %vm652_vm6, %v653_v55, %v3178_v22  ;;  %v1435_v35 = vor.u32 8388608, %v1434_v61 }
 0x1a2   : > { %v594_v63 = vsel %vm583_vm2, nan, %v593_v11  ;;  %v1406_v4 = vmul.f32 %v1405_v34, %v1403_v1  ;;  %v655_v5 = vadd.s32 %v654_v19, %v650_v50  ;;  %v1442_v51 = vsub.s32 32, %v1441_v16 }
 0x1a3   : > { %2052 = vst [vmem:[%s3092_s22 + $0x8] sm:$0xff] %v594_v63  ;;  %v1440_v6 = vshrl.u32 %v1439_v14, 5  ;;  %v1444_v7 = vshll.u32 %v2610_v23, %v1441_v16  ;;  %v1447_v26 = vshll.u32 %v2611_v27, %v1441_v16  ;;  %v1450_v18 = vshll.u32 %v2612_v29, %v1441_v16  ;;  %v356_v63 = vpop.f32.mrf.mxu1 }
 0x1a4   : > { %v1407_v15 = vxor.u32 2147483648, %v1406_v4  ;;  %v656_v21 = vadd.s32 536870912, %v655_v5  ;;  %v1445_v56 = vshrl.u32 %v2611_v27, %v1442_v51  ;;  %v1453_v28 = vshll.u32 %v2613_v31, %v1441_v16 }
 0x1a5   : > { %v1448_v62 = vshrl.u32 %v2612_v29, %v1442_v51  ;;  %v1451_v30 = vshrl.u32 %v2613_v31, %v1442_v51  ;;  %v1454_v32 = vshrl.u32 %v2614_v33, %v1442_v51  ;;  %v1456_v9 = vshll.u32 %v2614_v33, %v1441_v16 }
 0x1a6   : > { %v1408_v37 = vsel %vm1325_vm12, %v1407_v15, %v1406_v4  ;;  %v657_v58 = vshrl.u32 %v656_v21, 30  ;;  %v1446_v38 = vor.u32 %v1445_v56, %v1444_v7  ;;  %v1457_v20 = vshrl.u32 %v2615_v40, %v1442_v51 }
 0x1a7   : > { %v1411_v54 = vsel %vm3160_vm1, %v2811_v17, %v1408_v37  ;;  %v1449_v43 = vor.u32 %v1448_v62, %v1447_v26  ;;  %v1452_v45 = vor.u32 %v1451_v30, %v1450_v18  ;;  %v1455_v36 = vor.u32 %v1454_v32, %v1453_v28 }
 0x1a8   : > { %2427 = vcosq.f32 %v1411_v54  ;;  %v1416_v22 = vadd.s32 3, %v1412_v3  ;;  %v658_v57 = vshll.u32 %v657_v58, 30  ;;  %vm1459_vm7 = vcmp.lt.s32.totalorder %v1440_v6, 1 }
 0x1a9   : > { %2429 = vsinq.f32 %v1411_v54  ;;  %v1458_v13 = vor.u32 %v1457_v20, %v1456_v9  ;;  %vm1462_vm8 = vcmp.lt.s32.totalorder %v1440_v6, 4  ;;  %v1467_v39 = vsel %vm1459_vm7, %v1446_v38, %v1449_v43 }
 0x1aa   : > { %v3217_v59 = vsub.s32 %v655_v5, %v658_v57  ;;  %vm1461_vm9 = vcmp.lt.s32.totalorder %v1440_v6, 3  ;;  %v1468_v44 = vsel %vm1462_vm8, %v1455_v36, 920167782  ;;  %v1475_v52 = vshll.u32 %v1435_v35, 8 }
 0x1ab   : > { %v1443_v24 = vshrl.u32 %v2610_v23, %v1442_v51  ;;  %vm1460_vm10 = vcmp.lt.s32.totalorder %v1440_v6, 2  ;;  %v1469_v61 = vsel %vm1461_vm9, %v1452_v45, %v1468_v44  ;;  %v3222_v14 = vmul.f32 30.0, %v3128_v41 }
 0x1ac   : > { %v661_v12 = vsub.s32 0, %v3217_v59  ;;  %v1464_v8 = vsel %vm1462_vm8, %v1452_v45, 2102212464  ;;  %v1470_v53 = vsel %vm1460_vm10, %v1467_v39, %v1469_v61  ;;  %v1471_v42 = vsel %vm1459_vm7, %v1449_v43, %v1452_v45 }
 0x1ad   : > { %v681_v50 = vsub.s32 4, %v657_v58  ;;  %v1472_v55 = vsel %vm1462_vm8, %v1458_v13, 1326507024  ;;  %v3227_v0 = vmul.u32.u64.low %v1475_v52, %v1470_v53  ;;  %v3228_v1 = vmul.u32.u64.high %v1475_v52, %v1470_v53, %v3227_v0 }
 0x1ae   : > { %v1417_v34 = vand.u32 3, %v1416_v22  ;;  %v2185_v16 = vmin.u32 %v661_v12, %v3217_v59  ;;  %v1473_v11 = vsel %vm1461_vm9, %v1455_v36, %v1472_v55  ;;  %v1463_v41 = vsel %vm1459_vm7, %v1443_v24, %v1446_v38 }
 0x1af   : > { %v1465_v3 = vsel %vm1461_vm9, %v1449_v43, %v1464_v8  ;;  %v1474_v19 = vsel %vm1460_vm10, %v1471_v42, %v1473_v11  ;;  %v702_v35 = vand.u32 2139095040, %v3222_v14  ;;  %vm597_vm11 = vcmp.lt.s32.totalorder %v3030_v60, 0 }
 0x1b0   : > { %v663_v4 = vclz %v2185_v16  ;;  %v682_v5 = vsel %vm597_vm11, %v681_v50, %v657_v58  ;;  %v3240_v51 = vmul.u32.u64.low %v1475_v52, %v1474_v19  ;;  %v3241_v7 = vmul.u32.u64.high %v1475_v52, %v1474_v19, %v3240_v51 }
 0x1b1   : > { %v1466_v18 = vsel %vm1460_vm10, %v1463_v41, %v1465_v3  ;;  %v703_v15 = vshrl.u32 %v702_v35, 23  ;;  %v357_v21 = vadd.f32 %v356_v63, %v2789_v47  ;;  %vm1419_vm12 = vcmp.eq.s32.totalorder %v1417_v34, 0 }
 0x1b2   : > { %v2186_v26 = vadd.s32 4294967294, %v663_v4  ;;  %vm1422_vm13 = vcmp.eq.s32.totalorder %v1417_v34, 2  ;;  %vm3247_vm14 = vcmp.le.f32.partialorder %v595_v2, 0.7853982  ;;  %v1485_v28 = vadd.s32 1, %v3228_v1 }
 0x1b3   : > { %v651_v62 = vadd.s32 %v3177_v49, %v3174_v25  ;;  %v684_v6 = vsel %vm3247_vm14, 0, %v682_v5  ;;  %v2188_v30 = vadd.s32 4294967169, %v703_v15  ;;  %v1482_v37 = vmul.u32 %v1475_v52, %v1466_v18 }
 0x1b4   : > { %vm2187_vm15 = vcmp.lt.s32.totalorder %v2186_v26, 0  ;;  %vm1484_vm0 = vc.u32 %v3241_v7, %v3227_v0  ;;  %v699_v2 = vand.u32 2147483647, %v3222_v14  ;;  %v3259_v43 = vmul.f32 30.0, %v357_v21 }
 0x1b5   : > { %v2428_v32 = vpop.eup %2427  ;;  %v666_v9 = vsel %vm2187_vm15, 0, %v2186_v26  ;;  %v1486_v45 = vsel %vm1484_vm0, %v1485_v28, %v3228_v1  ;;  %v709_v36 = vadd.s32 1, %v2188_v30  ;;  %vm1415_vm1 = vweird.f32 %v2811_v17  ;;  %v336_v1 = vpop.f32.mrf.mxu0 }
 0x1b6   : > { %v2430_v58 = vpop.eup %2429  ;;  %v1423_v38 = vxor.u32 2147483648, %v2428_v32  ;;  %v667_v20 = vsub.s32 32, %v666_v9  ;;  %v671_v54 = vsub.s32 4294967266, %v666_v9  ;;  %v668_v49 = vshll.u32 %v3217_v59, %v666_v9 }
 0x1b7   : > { %v1420_v25 = vxor.u32 2147483648, %v2430_v58  ;;  %v1487_v39 = vadd.s32 %v1486_v45, %v1482_v37  ;;  %vm1418_vm2 = vcmp.lt.s32.totalorder %v1417_v34, 2  ;;  %vm710_vm3 = vcmp.gt.s32.totalorder %v709_v36, 0 }
 0x1b8   : > { %v1424_v22 = vsel %vm1422_vm13, %v1423_v38, %v2430_v58  ;;  %v669_v57 = vshrl.u32 %v651_v62, %v667_v20  ;;  %v672_v13 = vadd.s32 127, %v671_v54  ;;  %v688_v8 = vadd.s32 3, %v684_v6 }
 0x1b9   : > { %v1421_v44 = vsel %vm1419_vm12, %v2428_v32, %v1420_v25  ;;  %v1488_v12 = vadd.s32 536870912, %v1487_v39  ;;  %v706_v53 = vand.u32 8388607, %v699_v2  ;;  %v711_v42 = vsel %vm710_vm3, %v709_v36, 0 }
 0x1ba   : > { %v1425_v52 = vsel %vm1418_vm2, %v1421_v44, %v1424_v22  ;;  %v670_v24 = vor.u32 %v669_v57, %v668_v49  ;;  %v673_v61 = vshll.u32 %v672_v13, 23  ;;  %v1534_v17 = vand.u32 2139095040, %v3259_v43 }
 0x1bb   : > { %v1426_v59 = vsel %vm1415_vm1, nan, %v1425_v52  ;;  %v3269_v55 = vshrl.u32 %v1488_v12, 30  ;;  %v713_v34 = vand.u32 31, %v711_v42  ;;  %v3273_v3 = vand.u32 3, %v688_v8 }
 0x1bc   : > { %2060 = vst [vmem:[%s3092_s22 + $0x48] sm:$0xff] %v1426_v59  ;;  %v674_v50 = vor.u32 4788187, %v673_v61  ;;  %v677_v11 = vcvt.s32.f32 %v670_v24  ;;  %v707_v19 = vor.u32 8388608, %v706_v53  ;;  %v3276_v63 = vadd.f32 %v336_v1, %v2787_v46 }
 0x1bd   : > { %v1490_v41 = vshll.u32 %v3269_v55, 30  ;;  %v714_v35 = vsub.s32 32, %v713_v34  ;;  %v1483_v5 = vadd.s32 %v3227_v0, %v3241_v7  ;;  %v1535_v26 = vshrl.u32 %v1534_v17, 23 }
 0x1be   : > { %v675_v16 = vand.u32 2147483647, %v674_v50  ;;  %v712_v18 = vshrl.u32 %v711_v42, 5  ;;  %v716_v15 = vshll.u32 %v2610_v23, %v713_v34  ;;  %v719_v30 = vshll.u32 %v2611_v27, %v713_v34 }
 0x1bf   : > { %v3280_v51 = vsub.s32 %v1487_v39, %v1490_v41  ;;  %v717_v21 = vshrl.u32 %v2611_v27, %v714_v35  ;;  %v720_v28 = vshrl.u32 %v2612_v29, %v714_v35  ;;  %v723_v32 = vshrl.u32 %v2613_v31, %v714_v35 }
 0x1c0   : > { %v678_v4 = vmul.f32 %v677_v11, %v675_v16  ;;  %v722_v0 = vshll.u32 %v2612_v29, %v713_v34  ;;  %v725_v7 = vshll.u32 %v2613_v31, %v713_v34  ;;  %v726_v37 = vshrl.u32 %v2614_v33, %v714_v35 }
 0x1c1   : > { %v1493_v6 = vsub.s32 0, %v3280_v51  ;;  %v718_v9 = vor.u32 %v717_v21, %v716_v15  ;;  %v721_v20 = vor.u32 %v720_v28, %v719_v30  ;;  %v728_v54 = vshll.u32 %v2614_v33, %v713_v34 }
 0x1c2   : > { %v679_v62 = vxor.u32 2147483648, %v678_v4  ;;  %v724_v49 = vor.u32 %v723_v32, %v722_v0  ;;  %v727_v45 = vor.u32 %v726_v37, %v725_v7  ;;  %v729_v36 = vshrl.u32 %v2615_v40, %v714_v35 }
 0x1c3   : > { %v2217_v38 = vmin.u32 %v1493_v6, %v3280_v51  ;;  %vm1429_vm4 = vcmp.lt.s32.totalorder %v3108_v10, 0  ;;  %v747_v57 = vshll.u32 %v707_v19, 8  ;;  %v2220_v13 = vadd.s32 4294967169, %v1535_v26 }
 0x1c4   : > { %v680_v58 = vsel %vm597_vm11, %v679_v62, %v678_v4  ;;  %v715_v39 = vshrl.u32 %v2610_v23, %v714_v35  ;;  %v730_v44 = vor.u32 %v729_v36, %v728_v54  ;;  %vm731_vm5 = vcmp.lt.s32.totalorder %v712_v18, 1 }
 0x1c5   : > { %v683_v25 = vsel %vm3247_vm14, %v3030_v60, %v680_v58  ;;  %v1495_v22 = vclz %v2217_v38  ;;  %vm733_vm6 = vcmp.lt.s32.totalorder %v712_v18, 3  ;;  %vm734_vm7 = vcmp.lt.s32.totalorder %v712_v18, 4 }
 0x1c6   : > { %2431 = vcosq.f32 %v683_v25  ;;  %v739_v56 = vsel %vm731_vm5, %v718_v9, %v721_v20  ;;  %v736_v24 = vsel %vm734_vm7, %v724_v49, 2102212464  ;;  %v740_v61 = vsel %vm734_vm7, %v727_v45, 920167782 }
 0x1c7   : > { %2433 = vsinq.f32 %v683_v25  ;;  %v2218_v52 = vadd.s32 4294967294, %v1495_v22  ;;  %v743_v12 = vsel %vm731_vm5, %v721_v20, %v724_v49  ;;  %v744_v59 = vsel %vm734_vm7, %v730_v44, 1326507024 }
 0x1c8   : > { %vm732_vm9 = vcmp.lt.s32.totalorder %v712_v18, 2  ;;  %v741_v8 = vsel %vm733_vm6, %v724_v49, %v740_v61  ;;  %v745_v53 = vsel %vm733_vm6, %v727_v45, %v744_v59  ;;  %v1513_v50 = vsub.s32 4, %v3269_v55 }
 0x1c9   : > { %vm2219_vm8 = vcmp.lt.s32.totalorder %v2218_v52, 0  ;;  %v742_v17 = vsel %vm732_vm9, %v739_v56, %v741_v8  ;;  %v746_v1 = vsel %vm732_vm9, %v743_v12, %v745_v53  ;;  %v735_v11 = vsel %vm731_vm5, %v715_v39, %v718_v9 }
 0x1ca   : > { %v1498_v42 = vsel %vm2219_vm8, 0, %v2218_v52  ;;  %v737_v41 = vsel %vm733_vm6, %v721_v20, %v736_v24  ;;  %v3310_v19 = vmul.u32.u64.low %v747_v57, %v746_v1  ;;  %v3311_v35 = vmul.u32.u64.high %v747_v57, %v746_v1, %v3310_v19 }
 0x1cb   : > { %v1499_v34 = vsub.s32 32, %v1498_v42  ;;  %v1503_v16 = vsub.s32 4294967266, %v1498_v42  ;;  %v3313_v4 = vmul.u32.u64.low %v747_v57, %v742_v17  ;;  %v3314_v26 = vmul.u32.u64.high %v747_v57, %v742_v17, %v3313_v4 }
 0x1cc   : > { %v1500_v15 = vshll.u32 %v3280_v51, %v1498_v42  ;;  %v1541_v62 = vadd.s32 1, %v2220_v13  ;;  %vm690_vm10 = vcmp.lt.s32.totalorder %v3273_v3, 2  ;;  %vm3321_vm11 = vcmp.le.f32.partialorder %v1427_v48, 0.7853982 }
 0x1cd   : > { %v1501_v21 = vshrl.u32 %v1483_v5, %v1499_v34  ;;  %v1504_v28 = vadd.s32 127, %v1503_v16  ;;  %v1514_v30 = vsel %vm1429_vm4, %v1513_v50, %v3269_v55  ;;  %v738_v32 = vsel %vm732_vm9, %v735_v11, %v737_v41 }
 0x1ce   : > { %vm687_vm12 = vweird.f32 %v3030_v60  ;;  %vm1542_vm13 = vcmp.gt.s32.totalorder %v1541_v62, 0  ;;  %v3331_v9 = vmul.f32 30.0, %v3276_v63  ;;  %vm756_vm14 = vc.u32 %v3311_v35, %v3313_v4 }
 0x1cf   : > { %v1502_v51 = vor.u32 %v1501_v21, %v1500_v15  ;;  %v1505_v5 = vshll.u32 %v1504_v28, 23  ;;  %v757_v48 = vadd.s32 1, %v3314_v26  ;;  %v1531_v0 = vand.u32 2147483647, %v3259_v43 }
 0x1d0   : > { %v1543_v7 = vsel %vm1542_vm13, %v1541_v62, 0  ;;  %v1516_v55 = vsel %vm3321_vm11, 0, %v1514_v30  ;;  %v754_v18 = vmul.u32 %v747_v57, %v738_v32  ;;  %vm691_vm15 = vcmp.eq.s32.totalorder %v3273_v3, 0 }
 0x1d1   : > { %v1506_v37 = vor.u32 4788187, %v1505_v5  ;;  %v1545_v58 = vand.u32 31, %v1543_v7  ;;  %vm694_vm0 = vcmp.eq.s32.totalorder %v3273_v3, 2  ;;  %v1509_v63 = vcvt.s32.f32 %v1502_v51 }
 0x1d2   : > { %v758_v20 = vsel %vm756_vm14, %v757_v48, %v3314_v26  ;;  %v1520_v13 = vadd.s32 3, %v1516_v55  ;;  %v1538_v39 = vand.u32 8388607, %v1531_v0  ;;  %v806_v57 = vand.u32 2139095040, %v3331_v9 }
 0x1d3   : > { %v2432_v38 = vpop.eup %2431  ;;  %v1507_v49 = vand.u32 2147483647, %v1506_v37  ;;  %v759_v45 = vadd.s32 %v758_v20, %v754_v18  ;;  %v1546_v36 = vsub.s32 32, %v1545_v58  ;;  %v3345_v24 = vshrl.u32 %v1543_v7, 5 }
 0x1d4   : > { %v2434_v54 = vpop.eup %2433  ;;  %v695_v25 = vxor.u32 2147483648, %v2432_v38  ;;  %v1548_v12 = vshll.u32 %v2610_v23, %v1545_v58  ;;  %v1551_v34 = vshll.u32 %v2611_v27, %v1545_v58  ;;  %v1554_v16 = vshll.u32 %v2612_v29, %v1545_v58 }
 0x1d5   : > { %v692_v22 = vxor.u32 2147483648, %v2434_v54  ;;  %v1510_v52 = vmul.f32 %v1509_v63, %v1507_v49  ;;  %v760_v56 = vadd.s32 536870912, %v759_v45  ;;  %v1549_v59 = vshrl.u32 %v2611_v27, %v1546_v36 }
 0x1d6   : > { %v696_v44 = vsel %vm694_vm0, %v695_v25, %v2434_v54  ;;  %v1552_v8 = vshrl.u32 %v2612_v29, %v1546_v36  ;;  %v1555_v17 = vshrl.u32 %v2613_v31, %v1546_v36  ;;  %v1557_v11 = vshll.u32 %v2613_v31, %v1545_v58 }
 0x1d7   : > { %v693_v61 = vsel %vm691_vm15, %v2432_v38, %v692_v22  ;;  %v1511_v42 = vxor.u32 2147483648, %v1510_v52  ;;  %v3354_v50 = vshrl.u32 %v760_v56, 30  ;;  %v1550_v19 = vor.u32 %v1549_v59, %v1548_v12 }
 0x1d8   : > { %v697_v53 = vsel %vm690_vm10, %v693_v61, %v696_v44  ;;  %v1558_v26 = vshrl.u32 %v2614_v33, %v1546_v36  ;;  %v1553_v15 = vor.u32 %v1552_v8, %v1551_v34  ;;  %v1560_v21 = vshll.u32 %v2614_v33, %v1545_v58  ;;  %v360_v58 = vpop.f32.mrf.mxu1 }
 0x1d9   : > { %v698_v1 = vsel %vm687_vm12, nan, %v697_v53  ;;  %v1512_v41 = vsel %vm1429_vm4, %v1511_v42, %v1510_v52  ;;  %v762_v3 = vshll.u32 %v3354_v50, 30  ;;  %v1561_v28 = vshrl.u32 %v2615_v40, %v1546_v36 }
 0x1da   : > { %2053 = vst [vmem:[%s3092_s22 + $0x10] sm:$0xff] %v698_v1  ;;  %v1515_v60 = vsel %vm3321_vm11, %v3108_v10, %v1512_v41  ;;  %v1556_v30 = vor.u32 %v1555_v17, %v1554_v16  ;;  %v1559_v32 = vor.u32 %v1558_v26, %v1557_v11  ;;  %v3374_v51 = vand.u32 3, %v1520_v13 }
 0x1db   : > { %2435 = vcosq.f32 %v1515_v60  ;;  %v3372_v62 = vsub.s32 %v759_v45, %v762_v3  ;;  %v1539_v5 = vor.u32 8388608, %v1538_v39  ;;  %v1562_v48 = vor.u32 %v1561_v28, %v1560_v21 }
 0x1dc   : > { %2437 = vsinq.f32 %v1515_v60  ;;  %vm1563_vm1 = vcmp.lt.s32.totalorder %v3345_v24, 1  ;;  %vm1566_vm2 = vcmp.lt.s32.totalorder %v3345_v24, 4  ;;  %v807_v6 = vshrl.u32 %v806_v57, 23 }
 0x1dd   : > { %v765_v7 = vsub.s32 0, %v3372_v62  ;;  %v1547_v37 = vshrl.u32 %v2610_v23, %v1546_v36  ;;  %vm1565_vm3 = vcmp.lt.s32.totalorder %v3345_v24, 3  ;;  %v1571_v55 = vsel %vm1563_vm1, %v1550_v19, %v1553_v15 }
 0x1de   : > { %v1572_v18 = vsel %vm1566_vm2, %v1559_v32, 920167782  ;;  %vm1564_vm4 = vcmp.lt.s32.totalorder %v3345_v24, 2  ;;  %v1568_v63 = vsel %vm1566_vm2, %v1556_v30, 2102212464  ;;  %v1575_v25 = vsel %vm1563_vm1, %v1553_v15, %v1556_v30 }
 0x1df   : > { %v2189_v38 = vmin.u32 %v765_v7, %v3372_v62  ;;  %v1573_v20 = vsel %vm1565_vm3, %v1556_v30, %v1572_v18  ;;  %v1576_v49 = vsel %vm1566_vm2, %v1562_v48, 1326507024  ;;  %v1579_v45 = vshll.u32 %v1539_v5, 8 }
 0x1e0   : > { %v1574_v54 = vsel %vm1564_vm4, %v1571_v55, %v1573_v20  ;;  %v1567_v22 = vsel %vm1563_vm1, %v1547_v37, %v1550_v19  ;;  %v361_v13 = vadd.f32 %v360_v58, %v2787_v46  ;;  %v1569_v39 = vsel %vm1565_vm3, %v1553_v15, %v1568_v63 }
 0x1e1   : > { %v767_v36 = vclz %v2189_v38  ;;  %v1577_v57 = vsel %vm1565_vm3, %v1559_v32, %v1576_v49  ;;  %v3398_v44 = vmul.u32.u64.low %v1579_v45, %v1574_v54  ;;  %v3399_v52 = vmul.u32.u64.high %v1579_v45, %v1574_v54, %v3398_v44 }
 0x1e2   : > { %vm701_vm5 = vcmp.lt.s32.totalorder %v3222_v14, 0  ;;  %v1578_v61 = vsel %vm1564_vm4, %v1575_v25, %v1577_v57  ;;  %v2192_v12 = vadd.s32 4294967169, %v807_v6  ;;  %vm1523_vm6 = vcmp.eq.s32.totalorder %v3374_v51, 0  ;;  %v338_v6 = vpop.f32.mrf.mxu0 }
 0x1e3   : > { %v2190_v56 = vadd.s32 4294967294, %v767_v36  ;;  %vm1526_vm7 = vcmp.eq.s32.totalorder %v3374_v51, 2  ;;  %v3407_v59 = vmul.u32.u64.low %v1579_v45, %v1578_v61  ;;  %v3408_v8 = vmul.u32.u64.high %v1579_v45, %v1578_v61, %v3407_v59 }
 0x1e4   : > { %vm1519_vm8 = vweird.f32 %v3108_v10  ;;  %vm3413_vm9 = vcmp.le.f32.partialorder %v699_v2, 0.7853982  ;;  %v1570_v42 = vsel %vm1564_vm4, %v1567_v22, %v1569_v39  ;;  %v803_v17 = vand.u32 2147483647, %v3331_v9 }
 0x1e5   : > { %vm2191_vm10 = vcmp.lt.s32.totalorder %v2190_v56, 0  ;;  %v813_v1 = vadd.s32 1, %v2192_v12  ;;  %v755_v34 = vadd.s32 %v3313_v4, %v3311_v35  ;;  %v1589_v11 = vadd.s32 1, %v3399_v52 }
 0x1e6   : > { %v770_v16 = vsel %vm2191_vm10, 0, %v2190_v56  ;;  %v3423_v41 = vmul.f32 30.0, %v361_v13  ;;  %v785_v19 = vsub.s32 4, %v3354_v50  ;;  %v1586_v60 = vmul.u32 %v1579_v45, %v1570_v42 }
 0x1e7   : > { %v771_v3 = vsub.s32 32, %v770_v16  ;;  %v775_v2 = vsub.s32 4294967266, %v770_v16  ;;  %vm814_vm11 = vcmp.gt.s32.totalorder %v813_v1, 0  ;;  %v772_v24 = vshll.u32 %v3372_v62, %v770_v16 }
 0x1e8   : > { %v2436_v26 = vpop.eup %2435  ;;  %vm1588_vm12 = vc.u32 %v3408_v8, %v3398_v44  ;;  %v815_v15 = vsel %vm814_vm11, %v813_v1, 0  ;;  %v1638_v7 = vand.u32 2139095040, %v3423_v41  ;;  %v786_v18 = vsel %vm701_vm5, %v785_v19, %v3354_v50 }
 0x1e9   : > { %v2438_v21 = vpop.eup %2437  ;;  %v1527_v35 = vxor.u32 2147483648, %v2436_v26  ;;  %v773_v4 = vshrl.u32 %v755_v34, %v771_v3  ;;  %v776_v28 = vadd.s32 127, %v775_v2  ;;  %v1590_v30 = vsel %vm1588_vm12, %v1589_v11, %v3399_v52  ;;  %v362_v52 = vpop.f32.mrf.mxu1 }
 0x1ea   : > { %v1524_v32 = vxor.u32 2147483648, %v2438_v21  ;;  %v1591_v5 = vadd.s32 %v1590_v30, %v1586_v60  ;;  %v817_v48 = vand.u32 31, %v815_v15  ;;  %vm1522_vm13 = vcmp.lt.s32.totalorder %v3374_v51, 2 }
 0x1eb   : > { %v1528_v62 = vsel %vm1526_vm7, %v1527_v35, %v2438_v21  ;;  %v774_v37 = vor.u32 %v773_v4, %v772_v24  ;;  %v777_v55 = vshll.u32 %v776_v28, 23  ;;  %v810_v25 = vand.u32 8388607, %v803_v17 }
 0x1ec   : > { %v1525_v58 = vsel %vm1523_vm6, %v2436_v26, %v1524_v32  ;;  %v1592_v38 = vadd.s32 536870912, %v1591_v5  ;;  %v818_v63 = vsub.s32 32, %v817_v48  ;;  %v3442_v49 = vadd.f32 %v338_v6, %v2789_v47 }
 0x1ed   : > { %v1529_v20 = vsel %vm1522_vm13, %v1525_v58, %v1528_v62  ;;  %v778_v54 = vor.u32 4788187, %v777_v55  ;;  %v788_v50 = vsel %vm3413_vm9, 0, %v786_v18  ;;  %v1639_v51 = vshrl.u32 %v1638_v7, 23 }
 0x1ee   : > { %v1530_v45 = vsel %vm1519_vm8, nan, %v1529_v20  ;;  %v3448_v36 = vshrl.u32 %v1592_v38, 30  ;;  %v781_v13 = vcvt.s32.f32 %v774_v37  ;;  %v821_v39 = vshrl.u32 %v2611_v27, %v818_v63 }
 0x1ef   : > { %2061 = vst [vmem:[%s3092_s22 + $0x50] sm:$0xff] %v1530_v45  ;;  %v779_v22 = vand.u32 2147483647, %v778_v54  ;;  %v824_v57 = vshrl.u32 %v2612_v29, %v818_v63  ;;  %v816_v61 = vshrl.u32 %v815_v15, 5  ;;  %v820_v10 = vshll.u32 %v2610_v23, %v817_v48 }
 0x1f0   : > { %v1594_v56 = vshll.u32 %v3448_v36, 30  ;;  %v827_v12 = vshrl.u32 %v2613_v31, %v818_v63  ;;  %v823_v42 = vshll.u32 %v2611_v27, %v817_v48  ;;  %v829_v1 = vshll.u32 %v2613_v31, %v817_v48 }
 0x1f1   : > { %v782_v59 = vmul.f32 %v781_v13, %v779_v22  ;;  %v830_v34 = vshrl.u32 %v2614_v33, %v818_v63  ;;  %v826_v11 = vshll.u32 %v2612_v29, %v817_v48  ;;  %v833_v3 = vshrl.u32 %v2615_v40, %v818_v63 }
 0x1f2   : > { %v3459_v16 = vsub.s32 %v1591_v5, %v1594_v56  ;;  %v3464_v2 = vadd.f32 %v362_v52, %v2789_v47  ;;  %v822_v26 = vor.u32 %v821_v39, %v820_v10  ;;  %v825_v24 = vor.u32 %v824_v57, %v823_v42 }
 0x1f3   : > { %v783_v19 = vxor.u32 2147483648, %v782_v59  ;;  %v831_v60 = vor.u32 %v830_v34, %v829_v1  ;;  %v792_v15 = vadd.s32 3, %v788_v50  ;;  %v828_v35 = vor.u32 %v827_v12, %v826_v11 }
 0x1f4   : > { %v1597_v21 = vsub.s32 0, %v3459_v16  ;;  %v832_v4 = vshll.u32 %v2614_v33, %v817_v48  ;;  %v811_v30 = vor.u32 8388608, %v810_v25  ;;  %vm835_vm14 = vcmp.lt.s32.totalorder %v816_v61, 1 }
 0x1f5   : > { %v784_v28 = vsel %vm701_vm5, %v783_v19, %v782_v59  ;;  %v2224_v32 = vadd.s32 4294967169, %v1639_v51  ;;  %vm838_vm15 = vcmp.lt.s32.totalorder %v816_v61, 4  ;;  %v819_v62 = vshrl.u32 %v2610_v23, %v818_v63 }
 0x1f6   : > { %v787_v5 = vsel %vm3413_vm9, %v3222_v14, %v784_v28  ;;  %v2221_v7 = vmin.u32 %v1597_v21, %v3459_v16  ;;  %v834_v6 = vor.u32 %v833_v3, %v832_v4  ;;  %v843_v37 = vsel %vm835_vm14, %v822_v26, %v825_v24 }
 0x1f7   : > { %2439 = vcosq.f32 %v787_v5  ;;  %v844_v48 = vsel %vm838_vm15, %v831_v60, 920167782  ;;  %vm1533_vm0 = vcmp.lt.s32.totalorder %v3259_v43, 0  ;;  %vm837_vm1 = vcmp.lt.s32.totalorder %v816_v61, 3 }
 0x1f8   : > { %2441 = vsinq.f32 %v787_v5  ;;  %v1599_v55 = vclz %v2221_v7  ;;  %v840_v18 = vsel %vm838_vm15, %v828_v35, 2102212464  ;;  %vm836_vm2 = vcmp.lt.s32.totalorder %v816_v61, 2 }
 0x1f9   : > { %v845_v53 = vsel %vm837_vm1, %v828_v35, %v844_v48  ;;  %v847_v58 = vsel %vm835_vm14, %v825_v24, %v828_v35  ;;  %v851_v38 = vshll.u32 %v811_v30, 8  ;;  %v839_v54 = vsel %vm835_vm14, %v819_v62, %v822_v26 }
 0x1fa   : > { %v2222_v20 = vadd.s32 4294967294, %v1599_v55  ;;  %v846_v63 = vsel %vm836_vm2, %v843_v37, %v845_v53  ;;  %v848_v25 = vsel %vm838_vm15, %v834_v6, 1326507024  ;;  %v841_v45 = vsel %vm837_vm1, %v825_v24, %v840_v18 }
 0x1fb   : > { %v849_v50 = vsel %vm837_vm1, %v831_v60, %v848_v25  ;;  %v3483_v51 = vmul.u32.u64.low %v851_v38, %v846_v63  ;;  %v3484_v22 = vmul.u32.u64.high %v851_v38, %v846_v63, %v3483_v51  ;;  %v1587_v13 = vadd.s32 %v3398_v44, %v3408_v8 }
 0x1fc   : > { %vm2223_vm3 = vcmp.lt.s32.totalorder %v2222_v20, 0  ;;  %v850_v39 = vsel %vm836_vm2, %v847_v58, %v849_v50  ;;  %v1645_v57 = vadd.s32 1, %v2224_v32  ;;  %v1617_v56 = vsub.s32 4, %v3448_v36 }
 0x1fd   : > { %v1602_v52 = vsel %vm2223_vm3, 0, %v2222_v20  ;;  %v3491_v10 = vmul.u32.u64.low %v851_v38, %v850_v39  ;;  %v3492_v12 = vmul.u32.u64.high %v851_v38, %v850_v39, %v3491_v10  ;;  %v842_v1 = vsel %vm836_vm2, %v839_v54, %v841_v45 }
 0x1fe   : > { %v1603_v59 = vsub.s32 32, %v1602_v52  ;;  %v1607_v42 = vsub.s32 4294967266, %v1602_v52  ;;  %vm1646_vm4 = vcmp.gt.s32.totalorder %v1645_v57, 0  ;;  %v793_v34 = vand.u32 3, %v792_v15 }
 0x1ff   : > { %v861_v11 = vadd.s32 1, %v3484_v22  ;;  %v1635_v44 = vand.u32 2147483647, %v3423_v41  ;;  %v1647_v8 = vsel %vm1646_vm4, %v1645_v57, 0  ;;  %v1604_v3 = vshll.u32 %v3459_v16, %v1602_v52 }
 0x200   : > { %v1605_v19 = vshrl.u32 %v1587_v13, %v1603_v59  ;;  %v1608_v26 = vadd.s32 127, %v1607_v42  ;;  %v1649_v24 = vand.u32 31, %v1647_v8  ;;  %vm791_vm5 = vweird.f32 %v3222_v14 }
 0x201   : > { %vm3501_vm6 = vcmp.le.f32.partialorder %v1531_v0, 0.7853982  ;;  %v1618_v61 = vsel %vm1533_vm0, %v1617_v56, %v3448_v36  ;;  %v858_v15 = vmul.u32 %v851_v38, %v842_v1  ;;  %vm860_vm7 = vc.u32 %v3492_v12, %v3483_v51 }
 0x202   : > { %v1606_v16 = vor.u32 %v1605_v19, %v1604_v3  ;;  %v1609_v21 = vshll.u32 %v1608_v26, 23  ;;  %v862_v35 = vsel %vm860_vm7, %v861_v11, %v3484_v22  ;;  %v1650_v4 = vsub.s32 32, %v1649_v24 }
 0x203   : > { %vm794_vm8 = vcmp.lt.s32.totalorder %v793_v34, 2  ;;  %vm795_vm9 = vcmp.eq.s32.totalorder %v793_v34, 0  ;;  %vm798_vm10 = vcmp.eq.s32.totalorder %v793_v34, 2  ;;  %v863_v0 = vadd.s32 %v862_v35, %v858_v15 }
 0x204   : > { %v2440_v28 = vpop.eup %2439  ;;  %v1610_v30 = vor.u32 4788187, %v1609_v21  ;;  %v1620_v32 = vsel %vm3501_vm6, 0, %v1618_v61  ;;  %v1642_v36 = vand.u32 8388607, %v1635_v44  ;;  %v3515_v5 = vshrl.u32 %v1647_v8, 5 }
 0x205   : > { %v2442_v7 = vpop.eup %2441  ;;  %v799_v6 = vxor.u32 2147483648, %v2440_v28  ;;  %v864_v62 = vadd.s32 536870912, %v863_v0  ;;  %v1652_v37 = vshll.u32 %v2610_v23, %v1649_v24  ;;  %v1655_v48 = vshll.u32 %v2611_v27, %v1649_v24 }
 0x206   : > { %v796_v55 = vxor.u32 2147483648, %v2442_v7  ;;  %v1611_v18 = vand.u32 2147483647, %v1610_v30  ;;  %v1613_v53 = vcvt.s32.f32 %v1606_v16  ;;  %v1653_v58 = vshrl.u32 %v2611_v27, %v1650_v4 }
 0x207   : > { %v800_v38 = vsel %vm798_vm10, %v799_v6, %v2442_v7  ;;  %v865_v20 = vshrl.u32 %v864_v62, 30  ;;  %v1656_v54 = vshrl.u32 %v2612_v29, %v1650_v4  ;;  %v1659_v63 = vshrl.u32 %v2613_v31, %v1650_v4 }
 0x208   : > { %v797_v25 = vsel %vm795_vm9, %v2440_v28, %v796_v55  ;;  %v1614_v45 = vmul.f32 %v1613_v53, %v1611_v18  ;;  %v1661_v50 = vshll.u32 %v2613_v31, %v1649_v24  ;;  %v1662_v22 = vshrl.u32 %v2614_v33, %v1650_v4 }
 0x209   : > { %v801_v13 = vsel %vm794_vm8, %v797_v25, %v800_v38  ;;  %v866_v39 = vshll.u32 %v865_v20, 30  ;;  %v1658_v57 = vshll.u32 %v2612_v29, %v1649_v24  ;;  %v1665_v52 = vshrl.u32 %v2615_v40, %v1650_v4 }
 0x20a   : > { %v802_v56 = vsel %vm791_vm5, nan, %v801_v13  ;;  %v1615_v10 = vxor.u32 2147483648, %v1614_v45  ;;  %v1663_v59 = vor.u32 %v1662_v22, %v1661_v50  ;;  %v1664_v42 = vshll.u32 %v2614_v33, %v1649_v24 }
 0x20b   : > { %2054 = vst [vmem:[%s3092_s22 + $0x18] sm:$0xff] %v802_v56  ;;  %v3533_v1 = vsub.s32 %v863_v0, %v866_v39  ;;  %v1654_v11 = vor.u32 %v1653_v58, %v1652_v37  ;;  %v1657_v8 = vor.u32 %v1656_v54, %v1655_v48  ;;  %v1660_v3 = vor.u32 %v1659_v63, %v1658_v57 }
 0x20c   : > { %v1616_v34 = vsel %vm1533_vm0, %v1615_v10, %v1614_v45  ;;  %v1624_v19 = vadd.s32 3, %v1620_v32  ;;  %vm805_vm11 = vcmp.lt.s32.totalorder %v3331_v9, 0  ;;  %v1643_v26 = vor.u32 8388608, %v1642_v36 }
 0x20d   : > { %v1666_v61 = vor.u32 %v1665_v52, %v1664_v42  ;;  %v1619_v14 = vsel %vm3501_vm6, %v3259_v43, %v1616_v34  ;;  %v869_v24 = vsub.s32 0, %v3533_v1  ;;  %vm1670_vm12 = vcmp.lt.s32.totalorder %v3515_v5, 4 }
 0x20e   : > { %v3544_v15 = vmul.f32 30.0, %v3442_v49  ;;  %2443 = vcosq.f32 %v1619_v14  ;;  %vm1667_vm13 = vcmp.lt.s32.totalorder %v3515_v5, 1  ;;  %vm1669_vm14 = vcmp.lt.s32.totalorder %v3515_v5, 3 }
 0x20f   : > { %v1676_v16 = vsel %vm1670_vm12, %v1663_v59, 920167782  ;;  %2445 = vsinq.f32 %v1619_v14  ;;  %v2193_v21 = vmin.u32 %v869_v24, %v3533_v1  ;;  %v1672_v35 = vsel %vm1670_vm12, %v1660_v3, 2102212464 }
 0x210   : > { %v1675_v0 = vsel %vm1667_vm13, %v1654_v11, %v1657_v8  ;;  %v1651_v60 = vshrl.u32 %v2610_v23, %v1650_v4  ;;  %v1677_v28 = vsel %vm1669_vm14, %v1660_v3, %v1676_v16  ;;  %v1679_v30 = vsel %vm1667_vm13, %v1657_v8, %v1660_v3 }
 0x211   : > { %v1680_v32 = vsel %vm1670_vm12, %v1666_v61, 1326507024  ;;  %v871_v49 = vclz %v2193_v21  ;;  %v889_v36 = vsub.s32 4, %v865_v20  ;;  %vm1668_vm15 = vcmp.lt.s32.totalorder %v3515_v5, 2 }
 0x212   : > { %v1683_v7 = vshll.u32 %v1643_v26, 8  ;;  %v1671_v6 = vsel %vm1667_vm13, %v1651_v60, %v1654_v11  ;;  %v1673_v62 = vsel %vm1669_vm14, %v1657_v8, %v1672_v35  ;;  %v1678_v37 = vsel %vm1668_vm15, %v1675_v0, %v1677_v28 }
 0x213   : > { %v1681_v48 = vsel %vm1669_vm14, %v1663_v59, %v1680_v32  ;;  %v2194_v55 = vadd.s32 4294967294, %v871_v49  ;;  %vm3562_vm0 = vcmp.le.f32.partialorder %v803_v17, 0.7853982  ;;  %v910_v63 = vand.u32 2139095040, %v3544_v15 }
 0x214   : > { %v1682_v4 = vsel %vm1668_vm15, %v1679_v30, %v1681_v48  ;;  %v3557_v18 = vmul.u32.u64.low %v1683_v7, %v1678_v37  ;;  %v3558_v53 = vmul.u32.u64.high %v1683_v7, %v1678_v37, %v3557_v18  ;;  %v1625_v25 = vand.u32 3, %v1624_v19 }
 0x215   : > { %v3566_v38 = vmul.u32.u64.low %v1683_v7, %v1682_v4  ;;  %v3567_v54 = vmul.u32.u64.high %v1683_v7, %v1682_v4, %v3566_v38  ;;  %vm2195_vm1 = vcmp.lt.s32.totalorder %v2194_v55, 0  ;;  %v890_v5 = vsel %vm805_vm11, %v889_v36, %v865_v20 }
 0x216   : > { %v1674_v45 = vsel %vm1668_vm15, %v1671_v6, %v1673_v62  ;;  %v859_v50 = vadd.s32 %v3483_v51, %v3492_v12  ;;  %v874_v22 = vsel %vm2195_vm1, 0, %v2194_v55  ;;  %v911_v13 = vshrl.u32 %v910_v63, 23 }
 0x217   : > { %v3575_v17 = vmul.f32 30.0, %v3464_v2  ;;  %v875_v39 = vsub.s32 32, %v874_v22  ;;  %v879_v57 = vsub.s32 4294967266, %v874_v22  ;;  %v1693_v52 = vadd.s32 1, %v3558_v53 }
 0x218   : > { %v907_v56 = vand.u32 2147483647, %v3544_v15  ;;  %vm1623_vm2 = vweird.f32 %v3259_v43  ;;  %v892_v20 = vsel %vm3562_vm0, 0, %v890_v5  ;;  %v1690_v10 = vmul.u32 %v1683_v7, %v1674_v45 }
 0x219   : > { %vm1692_vm3 = vc.u32 %v3567_v54, %v3557_v18  ;;  %v2196_v51 = vadd.s32 4294967169, %v911_v13  ;;  %v876_v12 = vshll.u32 %v3533_v1, %v874_v22  ;;  %v877_v59 = vshrl.u32 %v859_v50, %v875_v39 }
 0x21a   : > { %v880_v2 = vadd.s32 127, %v879_v57  ;;  %v1694_v42 = vsel %vm1692_vm3, %v1693_v52, %v3558_v53  ;;  %vm1626_vm4 = vcmp.lt.s32.totalorder %v1625_v25, 2  ;;  %v1742_v3 = vand.u32 2139095040, %v3575_v17 }
 0x21b   : > { %v1695_v11 = vadd.s32 %v1694_v42, %v1690_v10  ;;  %v917_v8 = vadd.s32 1, %v2196_v51  ;;  %v2444_v34 = vpop.eup %2443  ;;  %vm1627_vm5 = vcmp.eq.s32.totalorder %v1625_v25, 0  ;;  %v878_v19 = vor.u32 %v877_v59, %v876_v12 }
 0x21c   : > { %v881_v26 = vshll.u32 %v880_v2, 23  ;;  %v896_v61 = vadd.s32 3, %v892_v20  ;;  %v2446_v14 = vpop.eup %2445  ;;  %vm1630_vm6 = vcmp.eq.s32.totalorder %v1625_v25, 2  ;;  %v1631_v24 = vxor.u32 2147483648, %v2444_v34 }
 0x21d   : > { %v1696_v16 = vadd.s32 536870912, %v1695_v11  ;;  %vm918_vm7 = vcmp.gt.s32.totalorder %v917_v8, 0  ;;  %v1628_v1 = vxor.u32 2147483648, %v2446_v14  ;;  %v914_v35 = vand.u32 8388607, %v907_v56 }
 0x21e   : > { %v882_v21 = vor.u32 4788187, %v881_v26  ;;  %v919_v0 = vsel %vm918_vm7, %v917_v8, 0  ;;  %v1632_v60 = vsel %vm1630_vm6, %v1631_v24, %v2446_v14  ;;  %v1743_v32 = vshrl.u32 %v1742_v3, 23 }
 0x21f   : > { %v1697_v28 = vshrl.u32 %v1696_v16, 30  ;;  %v921_v30 = vand.u32 31, %v919_v0  ;;  %v1629_v49 = vsel %vm1627_vm5, %v2444_v34, %v1628_v1  ;;  %v885_v7 = vcvt.s32.f32 %v878_v19 }
 0x220   : > { %v883_v36 = vand.u32 2147483647, %v882_v21  ;;  %v3589_v6 = vand.u32 3, %v896_v61  ;;  %v1633_v62 = vsel %vm1626_vm4, %v1629_v49, %v1632_v60  ;;  %vm1637_vm8 = vcmp.lt.s32.totalorder %v3423_v41, 0 }
 0x221   : > { %v1698_v37 = vshll.u32 %v1697_v28, 30  ;;  %v922_v48 = vsub.s32 32, %v921_v30  ;;  %v1739_v55 = vand.u32 2147483647, %v3575_v17  ;;  %v1634_v4 = vsel %vm1623_vm2, nan, %v1633_v62 }
 0x222   : > { %v886_v53 = vmul.f32 %v885_v7, %v883_v36  ;;  %v1691_v38 = vadd.s32 %v3557_v18, %v3567_v54  ;;  %v915_v63 = vor.u32 8388608, %v914_v35  ;;  %2062 = vst [vmem:[%s3092_s22 + $0x58] sm:$0xff] %v1634_v4  ;;  %v3600_v45 = vshrl.u32 %v919_v0, 5 }
 0x223   : > { %v3598_v5 = vsub.s32 %v1695_v11, %v1698_v37  ;;  %v925_v25 = vshrl.u32 %v2611_v27, %v922_v48  ;;  %v2228_v50 = vadd.s32 4294967169, %v1743_v32  ;;  %v1721_v13 = vsub.s32 4, %v1697_v28 }
 0x224   : > { %v887_v22 = vxor.u32 2147483648, %v886_v53  ;;  %v924_v39 = vshll.u32 %v2610_v23, %v921_v30  ;;  %v928_v57 = vshrl.u32 %v2612_v29, %v922_v48  ;;  %v927_v52 = vshll.u32 %v2611_v27, %v921_v30 }
 0x225   : > { %v1701_v43 = vsub.s32 0, %v3598_v5  ;;  %v930_v18 = vshll.u32 %v2612_v29, %v921_v30  ;;  %v931_v54 = vshrl.u32 %v2613_v31, %v922_v48  ;;  %v933_v51 = vshll.u32 %v2613_v31, %v921_v30 }
 0x226   : > { %v888_v20 = vsel %vm805_vm11, %v887_v22, %v886_v53  ;;  %v926_v10 = vor.u32 %v925_v25, %v924_v39  ;;  %v934_v12 = vshrl.u32 %v2614_v33, %v922_v48  ;;  %v929_v42 = vor.u32 %v928_v57, %v927_v52  ;;  %v342_v57 = vpop.f32.mrf.mxu0 }
 0x227   : > { %v891_v59 = vsel %vm3562_vm0, %v3331_v9, %v888_v20  ;;  %v2225_v2 = vmin.u32 %v1701_v43, %v3598_v5  ;;  %v932_v11 = vor.u32 %v931_v54, %v930_v18  ;;  %v936_v3 = vshll.u32 %v2614_v33, %v921_v30 }
 0x228   : > { %2447 = vcosq.f32 %v891_v59  ;;  %v935_v8 = vor.u32 %v934_v12, %v933_v51  ;;  %v937_v34 = vshrl.u32 %v2615_v40, %v922_v48  ;;  %v3619_v26 = vshll.u32 %v915_v63, 8 }
 0x229   : > { %2449 = vsinq.f32 %v891_v59  ;;  %v1703_v19 = vclz %v2225_v2  ;;  %v3623_v61 = vand.u32 8388607, %v1739_v55  ;;  %vm3627_vm9 = vcmp.le.f32.partialorder %v1635_v44, 0.7853982 }
 0x22a   : > { %v1722_v14 = vsel %vm1637_vm8, %v1721_v13, %v1697_v28  ;;  %v923_v24 = vshrl.u32 %v2610_v23, %v922_v48  ;;  %v938_v16 = vor.u32 %v937_v34, %v936_v3  ;;  %v1749_v1 = vadd.s32 1, %v2228_v50 }
 0x22b   : > { %v2226_v21 = vadd.s32 4294967294, %v1703_v19  ;;  %vm939_vm10 = vcmp.lt.s32.totalorder %v3600_v45, 1  ;;  %vm941_vm11 = vcmp.lt.s32.totalorder %v3600_v45, 3  ;;  %vm942_vm12 = vcmp.lt.s32.totalorder %v3600_v45, 4 }
 0x22c   : > { %v944_v35 = vsel %vm942_vm12, %v932_v11, 2102212464  ;;  %v947_v0 = vsel %vm939_vm10, %v926_v10, %v929_v42  ;;  %v948_v44 = vsel %vm942_vm12, %v935_v8, 920167782  ;;  %v951_v60 = vsel %vm939_vm10, %v929_v42, %v932_v11 }
 0x22d   : > { %vm2227_vm13 = vcmp.lt.s32.totalorder %v2226_v21, 0  ;;  %vm940_vm14 = vcmp.lt.s32.totalorder %v3600_v45, 2  ;;  %v949_v28 = vsel %vm941_vm11, %v932_v11, %v948_v44  ;;  %v952_v30 = vsel %vm942_vm12, %v938_v16, 1326507024 }
 0x22e   : > { %v1706_v32 = vsel %vm2227_vm13, 0, %v2226_v21  ;;  %v943_v49 = vsel %vm939_vm10, %v923_v24, %v926_v10  ;;  %v950_v36 = vsel %vm940_vm14, %v947_v0, %v949_v28  ;;  %v953_v7 = vsel %vm941_vm11, %v935_v8, %v952_v30 }
 0x22f   : > { %v1707_v62 = vsub.s32 32, %v1706_v32  ;;  %v1711_v37 = vsub.s32 4294967266, %v1706_v32  ;;  %v945_v48 = vsel %vm941_vm11, %v929_v42, %v944_v35  ;;  %v954_v4 = vsel %vm940_vm14, %v951_v60, %v953_v7 }
 0x230   : > { %v3649_v53 = vmul.u32.u64.low %v3619_v26, %v954_v4  ;;  %v3650_v63 = vmul.u32.u64.high %v3619_v26, %v954_v4, %v3649_v53  ;;  %v3653_v25 = vmul.u32.u64.low %v3619_v26, %v950_v36  ;;  %v3654_v50 = vmul.u32.u64.high %v3619_v26, %v950_v36, %v3653_v25 }
 0x231   : > { %v1708_v22 = vshll.u32 %v3598_v5, %v1706_v32  ;;  %v1709_v13 = vshrl.u32 %v1691_v38, %v1707_v62  ;;  %v1712_v39 = vadd.s32 127, %v1711_v37  ;;  %vm1750_vm15 = vcmp.gt.s32.totalorder %v1749_v1, 0 }
 0x232   : > { %vm895_vm0 = vweird.f32 %v3331_v9  ;;  %vm898_vm1 = vcmp.lt.s32.totalorder %v3589_v6, 2  ;;  %vm899_vm2 = vcmp.eq.s32.totalorder %v3589_v6, 0  ;;  %v946_v43 = vsel %vm940_vm14, %v943_v49, %v945_v48 }
 0x233   : > { %v1751_v52 = vsel %vm1750_vm15, %v1749_v1, 0  ;;  %v1710_v18 = vor.u32 %v1709_v13, %v1708_v22  ;;  %v1713_v54 = vshll.u32 %v1712_v39, 23  ;;  %v1724_v20 = vsel %vm3627_vm9, 0, %v1722_v14 }
 0x234   : > { %v1753_v5 = vand.u32 31, %v1751_v52  ;;  %vm902_vm3 = vcmp.eq.s32.totalorder %v3589_v6, 2  ;;  %vm964_vm4 = vc.u32 %v3650_v63, %v3653_v25  ;;  %v965_v38 = vadd.s32 1, %v3654_v50 }
 0x235   : > { %v343_v10 = vadd.f32 %v342_v57, %v2787_v46  ;;  %v2448_v51 = vpop.eup %2447  ;;  %v1714_v12 = vor.u32 4788187, %v1713_v54  ;;  %v962_v45 = vmul.u32 %v3619_v26, %v946_v43  ;;  %v1747_v59 = vor.u32 8388608, %v3623_v61 }
 0x236   : > { %v1754_v2 = vsub.s32 32, %v1753_v5  ;;  %v2450_v42 = vpop.eup %2449  ;;  %v903_v11 = vxor.u32 2147483648, %v2448_v51  ;;  %v1728_v8 = vadd.s32 3, %v1724_v20  ;;  %v966_v3 = vsel %vm964_vm4, %v965_v38, %v3654_v50 }
 0x237   : > { %v3673_v34 = vshrl.u32 %v1751_v52, 5  ;;  %v900_v19 = vxor.u32 2147483648, %v2450_v42  ;;  %v1715_v14 = vand.u32 2147483647, %v1714_v12  ;;  %v1717_v24 = vcvt.s32.f32 %v1710_v18 }
 0x238   : > { %v967_v16 = vadd.s32 %v966_v3, %v962_v45  ;;  %v904_v1 = vsel %vm902_vm3, %v903_v11, %v2450_v42  ;;  %v1756_v26 = vshll.u32 %v2610_v23, %v1753_v5  ;;  %v1757_v61 = vshrl.u32 %v2611_v27, %v1754_v2 }
 0x239   : > { %v1760_v21 = vshrl.u32 %v2612_v29, %v1754_v2  ;;  %v901_v35 = vsel %vm899_vm2, %v2448_v51, %v900_v19  ;;  %v1718_v0 = vmul.f32 %v1717_v24, %v1715_v14  ;;  %v1763_v60 = vshrl.u32 %v2613_v31, %v1754_v2 }
 0x23a   : > { %v968_v44 = vadd.s32 536870912, %v967_v16  ;;  %v905_v28 = vsel %vm898_vm1, %v901_v35, %v904_v1  ;;  %v1759_v30 = vshll.u32 %v2611_v27, %v1753_v5  ;;  %v1762_v32 = vshll.u32 %v2612_v29, %v1753_v5 }
 0x23b   : > { %v1765_v49 = vshll.u32 %v2613_v31, %v1753_v5  ;;  %v906_v36 = vsel %vm895_vm0, nan, %v905_v28  ;;  %v1719_v7 = vxor.u32 2147483648, %v1718_v0  ;;  %v1766_v37 = vshrl.u32 %v2614_v33, %v1754_v2 }
 0x23c   : > { %v969_v62 = vshrl.u32 %v968_v44, 30  ;;  %2055 = vst [vmem:[%s3092_s22 + $0x20] sm:$0xff] %v906_v36  ;;  %v1758_v48 = vor.u32 %v1757_v61, %v1756_v26  ;;  %v1761_v4 = vor.u32 %v1760_v21, %v1759_v30  ;;  %v1768_v53 = vshll.u32 %v2614_v33, %v1753_v5 }
 0x23d   : > { %v1769_v6 = vshrl.u32 %v2615_v40, %v1754_v2  ;;  %v1720_v50 = vsel %vm1637_vm8, %v1719_v7, %v1718_v0  ;;  %v1764_v13 = vor.u32 %v1763_v60, %v1762_v32  ;;  %v1767_v39 = vor.u32 %v1766_v37, %v1765_v49 }
 0x23e   : > { %v970_v22 = vshll.u32 %v969_v62, 30  ;;  %v1723_v9 = vsel %vm3627_vm9, %v3423_v41, %v1720_v50  ;;  %v3699_v57 = vand.u32 3, %v1728_v8  ;;  %v1787_v52 = vshll.u32 %v1747_v59, 8  ;;  %v366_v8 = vpop.f32.mrf.mxu1 }
 0x23f   : > { %v1770_v43 = vor.u32 %v1769_v6, %v1768_v53  ;;  %2451 = vcosq.f32 %v1723_v9  ;;  %vm1771_vm5 = vcmp.lt.s32.totalorder %v3673_v34, 1  ;;  %v3704_v54 = vmul.f32 30.0, %v343_v10 }
 0x240   : > { %v3701_v18 = vsub.s32 %v967_v16, %v970_v22  ;;  %2453 = vsinq.f32 %v1723_v9  ;;  %v1755_v20 = vshrl.u32 %v2610_v23, %v1754_v2  ;;  %vm1774_vm6 = vcmp.lt.s32.totalorder %v3673_v34, 4 }
 0x241   : > { %v1779_v5 = vsel %vm1771_vm5, %v1758_v48, %v1761_v4  ;;  %vm1773_vm7 = vcmp.lt.s32.totalorder %v3673_v34, 3  ;;  %v1776_v38 = vsel %vm1774_vm6, %v1764_v13, 2102212464  ;;  %v1780_v51 = vsel %vm1774_vm6, %v1767_v39, 920167782 }
 0x242   : > { %v973_v58 = vsub.s32 0, %v3701_v18  ;;  %vm1772_vm8 = vcmp.lt.s32.totalorder %v3673_v34, 2  ;;  %v1781_v12 = vsel %vm1773_vm7, %v1764_v13, %v1780_v51  ;;  %v1783_v45 = vsel %vm1771_vm5, %v1761_v4, %v1764_v13 }
 0x243   : > { %v1784_v59 = vsel %vm1774_vm6, %v1770_v43, 1326507024  ;;  %v1775_v42 = vsel %vm1771_vm5, %v1755_v20, %v1758_v48  ;;  %v1782_v2 = vsel %vm1772_vm8, %v1779_v5, %v1781_v12  ;;  %v1777_v3 = vsel %vm1773_vm7, %v1761_v4, %v1776_v38 }
 0x244   : > { %v2197_v10 = vmin.u32 %v973_v58, %v3701_v18  ;;  %v1785_v11 = vsel %vm1773_vm7, %v1767_v39, %v1784_v59  ;;  %v3716_v14 = vmul.u32.u64.low %v1787_v52, %v1782_v2  ;;  %v3717_v24 = vmul.u32.u64.high %v1787_v52, %v1782_v2, %v3716_v14 }
 0x245   : > { %v1786_v19 = vsel %vm1772_vm8, %v1783_v45, %v1785_v11  ;;  %v993_v1 = vsub.s32 4, %v969_v62  ;;  %vm909_vm9 = vcmp.lt.s32.totalorder %v3544_v15, 0  ;;  %v367_v21 = vadd.f32 %v366_v8, %v2787_v46 }
 0x246   : > { %v975_v16 = vclz %v2197_v10  ;;  %v3721_v26 = vmul.u32.u64.low %v1787_v52, %v1786_v19  ;;  %v3722_v61 = vmul.u32.u64.high %v1787_v52, %v1786_v19, %v3721_v26  ;;  %vm3727_vm10 = vcmp.le.f32.partialorder %v907_v56, 0.7853982 }
 0x247   : > { %v1778_v44 = vsel %vm1772_vm8, %v1775_v42, %v1777_v3  ;;  %v1014_v60 = vand.u32 2139095040, %v3704_v54  ;;  %vm1730_vm11 = vcmp.lt.s32.totalorder %v3699_v57, 2  ;;  %vm1731_vm12 = vcmp.eq.s32.totalorder %v3699_v57, 0 }
 0x248   : > { %v2198_v0 = vadd.s32 4294967294, %v975_v16  ;;  %v1797_v28 = vadd.s32 1, %v3717_v24  ;;  %v1011_v46 = vand.u32 2147483647, %v3704_v54  ;;  %vm1727_vm13 = vweird.f32 %v3423_v41 }
 0x249   : > { %vm1734_vm14 = vcmp.eq.s32.totalorder %v3699_v57, 2  ;;  %v994_v56 = vsel %vm909_vm9, %v993_v1, %v969_v62  ;;  %v1015_v34 = vshrl.u32 %v1014_v60, 23  ;;  %v1794_v32 = vmul.u32 %v1787_v52, %v1778_v44 }
 0x24a   : > { %vm2199_vm15 = vcmp.lt.s32.totalorder %v2198_v0, 0  ;;  %vm1796_vm0 = vc.u32 %v3722_v61, %v3716_v14  ;;  %v3744_v49 = vmul.f32 30.0, %v367_v21  ;;  %v963_v36 = vadd.s32 %v3653_v25, %v3650_v63 }
 0x24b   : > { %v978_v30 = vsel %vm2199_vm15, 0, %v2198_v0  ;;  %v1798_v48 = vsel %vm1796_vm0, %v1797_v28, %v3717_v24  ;;  %v996_v53 = vsel %vm3727_vm10, 0, %v994_v56  ;;  %v2200_v6 = vadd.s32 4294967169, %v1015_v34 }
 0x24c   : > { %v979_v7 = vsub.s32 32, %v978_v30  ;;  %v983_v37 = vsub.s32 4294967266, %v978_v30  ;;  %v2452_v4 = vpop.eup %2451  ;;  %v1799_v62 = vadd.s32 %v1798_v48, %v1794_v32  ;;  %v1018_v50 = vand.u32 8388607, %v1011_v46 }
 0x24d   : > { %v2454_v22 = vpop.eup %2453  ;;  %v1735_v13 = vxor.u32 2147483648, %v2452_v4  ;;  %v980_v39 = vshll.u32 %v3701_v18, %v978_v30  ;;  %v1021_v52 = vadd.s32 1, %v2200_v6  ;;  %v1846_v20 = vand.u32 2139095040, %v3744_v49 }
 0x24e   : > { %v981_v9 = vshrl.u32 %v963_v36, %v979_v7  ;;  %v984_v43 = vadd.s32 127, %v983_v37  ;;  %v1732_v63 = vxor.u32 2147483648, %v2454_v22  ;;  %v1800_v25 = vadd.s32 536870912, %v1799_v62 }
 0x24f   : > { %v1736_v5 = vsel %vm1734_vm14, %v1735_v13, %v2454_v22  ;;  %v1000_v51 = vadd.s32 3, %v996_v53  ;;  %v1019_v59 = vor.u32 8388608, %v1018_v50  ;;  %vm1022_vm1 = vcmp.gt.s32.totalorder %v1021_v52, 0 }
 0x250   : > { %v982_v58 = vor.u32 %v981_v9, %v980_v39  ;;  %v985_v38 = vshll.u32 %v984_v43, 23  ;;  %v1733_v12 = vsel %vm1731_vm12, %v2452_v4, %v1732_v63  ;;  %v1801_v45 = vshrl.u32 %v1800_v25, 30 }
 0x251   : > { %v1737_v18 = vsel %vm1730_vm11, %v1733_v12, %v1736_v5  ;;  %v1023_v42 = vsel %vm1022_vm1, %v1021_v52, 0  ;;  %v1843_v2 = vand.u32 2147483647, %v3744_v49  ;;  %v1847_v3 = vshrl.u32 %v1846_v20, 23 }
 0x252   : > { %v986_v10 = vor.u32 4788187, %v985_v38  ;;  %v1738_v11 = vsel %vm1727_vm13, nan, %v1737_v18  ;;  %v1802_v8 = vshll.u32 %v1801_v45, 30  ;;  %v989_v24 = vcvt.s32.f32 %v982_v58 }
 0x253   : > { %2063 = vst [vmem:[%s3092_s22 + $0x60] sm:$0xff] %v1738_v11  ;;  %vm1741_vm2 = vcmp.lt.s32.totalorder %v3575_v17, 0  ;;  %v1025_v16 = vand.u32 31, %v1023_v42  ;;  %v3766_v1 = vand.u32 3, %v1000_v51  ;;  %v1795_v57 = vadd.s32 %v3716_v14, %v3722_v61 }
 0x254   : > { %v987_v19 = vand.u32 2147483647, %v986_v10  ;;  %v3770_v26 = vsub.s32 %v1799_v62, %v1802_v8  ;;  %v3772_v21 = vshll.u32 %v1019_v59, 8  ;;  %v1825_v41 = vsub.s32 4, %v1801_v45 }
 0x255   : > { %v1026_v44 = vsub.s32 32, %v1025_v16  ;;  %v3776_v60 = vand.u32 8388607, %v1843_v2  ;;  %v1024_v56 = vshrl.u32 %v1023_v42, 5  ;;  %v1028_v34 = vshll.u32 %v2610_v23, %v1025_v16 }
 0x256   : > { %v990_v0 = vmul.f32 %v989_v24, %v987_v19  ;;  %v1805_v28 = vsub.s32 0, %v3770_v26  ;;  %v2232_v30 = vadd.s32 4294967169, %v1847_v3  ;;  %vm3782_vm3 = vcmp.le.f32.partialorder %v1739_v55, 0.7853982 }
 0x257   : > { %v1029_v61 = vshrl.u32 %v2611_v27, %v1026_v44  ;;  %v1031_v36 = vshll.u32 %v2611_v27, %v1025_v16  ;;  %v1032_v7 = vshrl.u32 %v2612_v29, %v1026_v44  ;;  %v1034_v48 = vshll.u32 %v2612_v29, %v1025_v16 }
 0x258   : > { %v991_v32 = vxor.u32 2147483648, %v990_v0  ;;  %v2229_v37 = vmin.u32 %v1805_v28, %v3770_v26  ;;  %v1035_v4 = vshrl.u32 %v2613_v31, %v1026_v44  ;;  %v1037_v53 = vshll.u32 %v2613_v31, %v1025_v16  ;;  %v344_v28 = vpop.f32.mrf.mxu0 }
 0x259   : > { %v1030_v62 = vor.u32 %v1029_v61, %v1028_v34  ;;  %v1033_v6 = vor.u32 %v1032_v7, %v1031_v36  ;;  %v1038_v50 = vshrl.u32 %v2614_v33, %v1026_v44  ;;  %v1826_v39 = vsel %vm1741_vm2, %v1825_v41, %v1801_v45 }
 0x25a   : > { %v992_v55 = vsel %vm909_vm9, %v991_v32, %v990_v0  ;;  %v1807_v13 = vclz %v2229_v37  ;;  %vm1043_vm4 = vcmp.lt.s32.totalorder %v1024_v56, 1  ;;  %v1036_v9 = vor.u32 %v1035_v4, %v1034_v48 }
 0x25b   : > { %v995_v22 = vsel %vm3727_vm10, %v3544_v15, %v992_v55  ;;  %v1039_v43 = vor.u32 %v1038_v50, %v1037_v53  ;;  %vm1044_vm5 = vcmp.lt.s32.totalorder %v1024_v56, 2  ;;  %v1040_v25 = vshll.u32 %v2614_v33, %v1025_v16 }
 0x25c   : > { %2455 = vcosq.f32 %v995_v22  ;;  %v2230_v63 = vadd.s32 4294967294, %v1807_v13  ;;  %v1041_v52 = vshrl.u32 %v2615_v40, %v1026_v44  ;;  %v1027_v20 = vshrl.u32 %v2610_v23, %v1026_v44 }
 0x25d   : > { %2457 = vsinq.f32 %v995_v22  ;;  %vm1045_vm6 = vcmp.lt.s32.totalorder %v1024_v56, 3  ;;  %vm1046_vm7 = vcmp.lt.s32.totalorder %v1024_v56, 4  ;;  %v1051_v35 = vsel %vm1043_vm4, %v1030_v62, %v1033_v6 }
 0x25e   : > { %vm2231_vm8 = vcmp.lt.s32.totalorder %v2230_v63, 0  ;;  %v1042_v5 = vor.u32 %v1041_v52, %v1040_v25  ;;  %v1048_v58 = vsel %vm1046_vm7, %v1036_v9, 2102212464  ;;  %v1052_v38 = vsel %vm1046_vm7, %v1039_v43, 920167782 }
 0x25f   : > { %v1810_v51 = vsel %vm2231_vm8, 0, %v2230_v63  ;;  %v1047_v12 = vsel %vm1043_vm4, %v1027_v20, %v1030_v62  ;;  %v1049_v45 = vsel %vm1045_vm6, %v1033_v6, %v1048_v58  ;;  %v1053_v59 = vsel %vm1045_vm6, %v1036_v9, %v1052_v38 }
 0x260   : > { %v1811_v18 = vsub.s32 32, %v1810_v51  ;;  %v1815_v10 = vsub.s32 4294967266, %v1810_v51  ;;  %v1828_v42 = vsel %vm3782_vm3, 0, %v1826_v39  ;;  %v1055_v11 = vsel %vm1043_vm4, %v1033_v6, %v1036_v9 }
 0x261   : > { %v1812_v8 = vshll.u32 %v3770_v26, %v1810_v51  ;;  %v1054_v3 = vsel %vm1044_vm5, %v1051_v35, %v1053_v59  ;;  %v1056_v19 = vsel %vm1046_vm7, %v1042_v5, 1326507024  ;;  %v1853_v24 = vadd.s32 1, %v2232_v30 }
 0x262   : > { %v1813_v16 = vshrl.u32 %v1795_v57, %v1811_v18  ;;  %v1816_v0 = vadd.s32 127, %v1815_v10  ;;  %v1050_v41 = vsel %vm1044_vm5, %v1047_v12, %v1049_v45  ;;  %v1057_v44 = vsel %vm1045_vm6, %v1039_v43, %v1056_v19 }
 0x263   : > { %v1058_v34 = vsel %vm1044_vm5, %v1055_v11, %v1057_v44  ;;  %v3820_v32 = vmul.u32.u64.low %v3772_v21, %v1054_v3  ;;  %v3821_v61 = vmul.u32.u64.high %v3772_v21, %v1054_v3, %v3820_v32  ;;  %vm1854_vm9 = vcmp.gt.s32.totalorder %v1853_v24, 0 }
 0x264   : > { %v1814_v26 = vor.u32 %v1813_v16, %v1812_v8  ;;  %v1817_v36 = vshll.u32 %v1816_v0, 23  ;;  %v3825_v7 = vmul.u32.u64.low %v3772_v21, %v1058_v34  ;;  %v3826_v30 = vmul.u32.u64.high %v3772_v21, %v1058_v34, %v3825_v7 }
 0x265   : > { %vm999_vm10 = vweird.f32 %v3544_v15  ;;  %vm1002_vm11 = vcmp.lt.s32.totalorder %v3766_v1, 2  ;;  %v1855_v57 = vsel %vm1854_vm9, %v1853_v24, 0  ;;  %v345_v56 = vadd.f32 %v344_v28, %v2789_v47 }
 0x266   : > { %vm1003_vm12 = vcmp.eq.s32.totalorder %v3766_v1, 0  ;;  %vm1006_vm13 = vcmp.eq.s32.totalorder %v3766_v1, 2  ;;  %v1818_v37 = vor.u32 4788187, %v1817_v36  ;;  %v1857_v48 = vand.u32 31, %v1855_v57 }
 0x267   : > { %v1832_v4 = vadd.s32 3, %v1828_v42  ;;  %v1066_v53 = vmul.u32 %v3772_v21, %v1050_v41  ;;  %v1069_v55 = vadd.s32 1, %v3821_v61  ;;  %v1851_v62 = vor.u32 8388608, %v3776_v60 }
 0x268   : > { %v1819_v50 = vand.u32 2147483647, %v1818_v37  ;;  %v1821_v22 = vcvt.s32.f32 %v1814_v26  ;;  %vm1068_vm14 = vc.u32 %v3826_v30, %v3820_v32  ;;  %v1858_v13 = vsub.s32 32, %v1857_v48 }
 0x269   : > { %v2456_v6 = vpop.eup %2455  ;;  %v1070_v43 = vsel %vm1068_vm14, %v1069_v55, %v3821_v61  ;;  %v3839_v63 = vshrl.u32 %v1855_v57, 5  ;;  %v3841_v25 = vmul.f32 30.0, %v345_v56  ;;  %v1860_v60 = vshll.u32 %v2610_v23, %v1857_v48 }
 0x26a   : > { %v2458_v39 = vpop.eup %2457  ;;  %v1007_v9 = vxor.u32 2147483648, %v2456_v6  ;;  %v1822_v52 = vmul.f32 %v1821_v22, %v1819_v50  ;;  %v1071_v20 = vadd.s32 %v1070_v43, %v1066_v53  ;;  %v1861_v5 = vshrl.u32 %v2611_v27, %v1858_v13  ;;  %v368_v43 = vpop.f32.mrf.mxu1 }
 0x26b   : > { %v1004_v21 = vxor.u32 2147483648, %v2458_v39  ;;  %v1863_v58 = vshll.u32 %v2611_v27, %v1857_v48  ;;  %v1864_v38 = vshrl.u32 %v2612_v29, %v1858_v13  ;;  %v1866_v59 = vshll.u32 %v2612_v29, %v1857_v48 }
 0x26c   : > { %v1008_v35 = vsel %vm1006_vm13, %v1007_v9, %v2458_v39  ;;  %v1823_v12 = vxor.u32 2147483648, %v1822_v52  ;;  %v1072_v45 = vadd.s32 536870912, %v1071_v20  ;;  %v1862_v10 = vor.u32 %v1861_v5, %v1860_v60 }
 0x26d   : > { %v1005_v51 = vsel %vm1003_vm12, %v2456_v6, %v1004_v21  ;;  %v1865_v42 = vor.u32 %v1864_v38, %v1863_v58  ;;  %v1867_v11 = vshrl.u32 %v2613_v31, %v1858_v13  ;;  %v1869_v24 = vshll.u32 %v2613_v31, %v1857_v48 }
 0x26e   : > { %v1009_v18 = vsel %vm1002_vm11, %v1005_v51, %v1008_v35  ;;  %v1824_v3 = vsel %vm1741_vm2, %v1823_v12, %v1822_v52  ;;  %v1073_v19 = vshrl.u32 %v1072_v45, 30  ;;  %v1870_v1 = vshrl.u32 %v2614_v33, %v1858_v13 }
 0x26f   : > { %v1010_v8 = vsel %vm999_vm10, nan, %v1009_v18  ;;  %v1827_v16 = vsel %vm3782_vm3, %v3575_v17, %v1824_v3  ;;  %v1872_v0 = vshll.u32 %v2614_v33, %v1857_v48  ;;  %v1873_v41 = vshrl.u32 %v2615_v40, %v1858_v13 }
 0x270   : > { %2056 = vst [vmem:[%s3092_s22 + $0x28] sm:$0xff] %v1010_v8  ;;  %2459 = vcosq.f32 %v1827_v16  ;;  %v1074_v15 = vshll.u32 %v1073_v19, 30  ;;  %v1868_v44 = vor.u32 %v1867_v11, %v1866_v59  ;;  %v1871_v28 = vor.u32 %v1870_v1, %v1869_v24 }
 0x271   : > { %2461 = vsinq.f32 %v1827_v16  ;;  %v1874_v34 = vor.u32 %v1873_v41, %v1872_v0  ;;  %v3867_v61 = vand.u32 3, %v1832_v4  ;;  %vm1875_vm15 = vcmp.lt.s32.totalorder %v3839_v63, 1 }
 0x272   : > { %v3869_v26 = vsub.s32 %v1071_v20, %v1074_v15  ;;  %v1891_v14 = vshll.u32 %v1851_v62, 8  ;;  %v1859_v36 = vshrl.u32 %v2610_v23, %v1858_v13  ;;  %vm1878_vm0 = vcmp.lt.s32.totalorder %v3839_v63, 4 }
 0x273   : > { %v1883_v7 = vsel %vm1875_vm15, %v1862_v10, %v1865_v42  ;;  %v1118_v57 = vand.u32 2139095040, %v3841_v25  ;;  %vm1876_vm1 = vcmp.lt.s32.totalorder %v3839_v63, 2  ;;  %vm1877_vm2 = vcmp.lt.s32.totalorder %v3839_v63, 3 }
 0x274   : > { %v1077_v56 = vsub.s32 0, %v3869_v26  ;;  %v1884_v37 = vsel %vm1878_vm0, %v1871_v28, 920167782  ;;  %v1880_v48 = vsel %vm1878_vm0, %v1868_v44, 2102212464  ;;  %v1887_v53 = vsel %vm1875_vm15, %v1865_v42, %v1868_v44 }
 0x275   : > { %v1885_v4 = vsel %vm1877_vm2, %v1868_v44, %v1884_v37  ;;  %v1888_v55 = vsel %vm1878_vm0, %v1874_v34, 1326507024  ;;  %v1097_v6 = vsub.s32 4, %v1073_v19  ;;  %vm3897_vm3 = vcmp.le.f32.partialorder %v1011_v46, 0.7853982 }
 0x276   : > { %v2201_v62 = vmin.u32 %v1077_v56, %v3869_v26  ;;  %v1886_v50 = vsel %vm1876_vm1, %v1883_v7, %v1885_v4  ;;  %v1889_v22 = vsel %vm1877_vm2, %v1871_v28, %v1888_v55  ;;  %v1879_v20 = vsel %vm1875_vm15, %v1859_v36, %v1862_v10 }
 0x277   : > { %v1890_v13 = vsel %vm1876_vm1, %v1887_v53, %v1889_v22  ;;  %v3891_v39 = vmul.u32.u64.low %v1891_v14, %v1886_v50  ;;  %v3892_v9 = vmul.u32.u64.high %v1891_v14, %v1886_v50, %v3891_v39  ;;  %v1881_v60 = vsel %vm1877_vm2, %v1865_v42, %v1880_v48 }
 0x278   : > { %v1079_v52 = vclz %v2201_v62  ;;  %vm1013_vm4 = vcmp.lt.s32.totalorder %v3704_v54, 0  ;;  %v3906_v35 = vmul.u32.u64.low %v1891_v14, %v1890_v13  ;;  %v3907_v5 = vmul.u32.u64.high %v1891_v14, %v1890_v13, %v3906_v35 }
 0x279   : > { %v1119_v58 = vshrl.u32 %v1118_v57, 23  ;;  %vm1831_vm5 = vweird.f32 %v3575_v17  ;;  %vm1834_vm6 = vcmp.lt.s32.totalorder %v3867_v61, 2  ;;  %v1098_v38 = vsel %vm1013_vm4, %v1097_v6, %v1073_v19 }
 0x27a   : > { %v2202_v46 = vadd.s32 4294967294, %v1079_v52  ;;  %v369_v51 = vadd.f32 %v368_v43, %v2789_v47  ;;  %vm1835_vm7 = vcmp.eq.s32.totalorder %v3867_v61, 0  ;;  %v1882_v12 = vsel %vm1876_vm1, %v1879_v20, %v1881_v60 }
 0x27b   : > { %v1901_v45 = vadd.s32 1, %v3892_v9  ;;  %v2204_v59 = vadd.s32 4294967169, %v1119_v58  ;;  %vm1838_vm8 = vcmp.eq.s32.totalorder %v3867_v61, 2  ;;  %v1067_v18 = vadd.s32 %v3820_v32, %v3826_v30 }
 0x27c   : > { %vm2203_vm9 = vcmp.lt.s32.totalorder %v2202_v46, 0  ;;  %v1115_v10 = vand.u32 2147483647, %v3841_v25  ;;  %v1100_v47 = vsel %vm3897_vm3, 0, %v1098_v38  ;;  %vm1900_vm10 = vc.u32 %v3907_v5, %v3891_v39 }
 0x27d   : > { %v2460_v42 = vpop.eup %2459  ;;  %v1082_v11 = vsel %vm2203_vm9, 0, %v2202_v46  ;;  %v1125_v63 = vadd.s32 1, %v2204_v59  ;;  %v1898_v16 = vmul.u32 %v1891_v14, %v1882_v12  ;;  %v1902_v30 = vsel %vm1900_vm10, %v1901_v45, %v3892_v9 }
 0x27e   : > { %v2462_v8 = vpop.eup %2461  ;;  %v1839_v3 = vxor.u32 2147483648, %v2460_v42  ;;  %v1083_v19 = vsub.s32 32, %v1082_v11  ;;  %v1087_v24 = vsub.s32 4294967266, %v1082_v11  ;;  %v1084_v32 = vshll.u32 %v3869_v26, %v1082_v11 }
 0x27f   : > { %v1836_v1 = vxor.u32 2147483648, %v2462_v8  ;;  %vm1126_vm11 = vcmp.gt.s32.totalorder %v1125_v63, 0  ;;  %v1903_v44 = vadd.s32 %v1902_v30, %v1898_v16  ;;  %v1104_v34 = vadd.s32 3, %v1100_v47 }
 0x280   : > { %v1840_v0 = vsel %vm1838_vm8, %v1839_v3, %v2462_v8  ;;  %v1085_v41 = vshrl.u32 %v1067_v18, %v1083_v19  ;;  %v1088_v15 = vadd.s32 127, %v1087_v24  ;;  %v1127_v36 = vsel %vm1126_vm11, %v1125_v63, 0 }
 0x281   : > { %v1837_v28 = vsel %vm1835_vm7, %v2460_v42, %v1836_v1  ;;  %v3932_v7 = vmul.f32 30.0, %v369_v51  ;;  %v1904_v56 = vadd.s32 536870912, %v1903_v44  ;;  %v1122_v48 = vand.u32 8388607, %v1115_v10 }
 0x282   : > { %v1841_v26 = vsel %vm1834_vm6, %v1837_v28, %v1840_v0  ;;  %v1086_v14 = vor.u32 %v1085_v41, %v1084_v32  ;;  %v1089_v57 = vshll.u32 %v1088_v15, 23  ;;  %v1129_v4 = vand.u32 31, %v1127_v36 }
 0x283   : > { %v1842_v37 = vsel %vm1831_vm5, nan, %v1841_v26  ;;  %v3941_v55 = vshrl.u32 %v1904_v56, 30  ;;  %v3943_v62 = vand.u32 3, %v1104_v34  ;;  %v1950_v61 = vand.u32 2139095040, %v3932_v7 }
 0x284   : > { %2064 = vst [vmem:[%s3092_s22 + $0x68] sm:$0xff] %v1842_v37  ;;  %v1090_v53 = vor.u32 4788187, %v1089_v57  ;;  %v1130_v6 = vsub.s32 32, %v1129_v4  ;;  %v1093_v22 = vcvt.s32.f32 %v1086_v14  ;;  %v1947_v17 = vand.u32 2147483647, %v3932_v7 }
 0x285   : > { %v1906_v13 = vshll.u32 %v3941_v55, 30  ;;  %v1123_v9 = vor.u32 8388608, %v1122_v48  ;;  %v1132_v58 = vshll.u32 %v2610_v23, %v1129_v4  ;;  %v1128_v38 = vshrl.u32 %v1127_v36, 5 }
 0x286   : > { %v1091_v50 = vand.u32 2147483647, %v1090_v53  ;;  %v1133_v43 = vshrl.u32 %v2611_v27, %v1130_v6  ;;  %v1136_v52 = vshrl.u32 %v2612_v29, %v1130_v6  ;;  %v1139_v20 = vshrl.u32 %v2613_v31, %v1130_v6 }
 0x287   : > { %v3951_v35 = vsub.s32 %v1903_v44, %v1906_v13  ;;  %v1142_v46 = vshrl.u32 %v2614_v33, %v1130_v6  ;;  %v1135_v51 = vshll.u32 %v2611_v27, %v1129_v4  ;;  %v1138_v12 = vshll.u32 %v2612_v29, %v1129_v4 }
 0x288   : > { %v1094_v60 = vmul.f32 %v1093_v22, %v1091_v50  ;;  %v1951_v45 = vshrl.u32 %v1950_v61, 23  ;;  %v1134_v42 = vor.u32 %v1133_v43, %v1132_v58  ;;  %v1141_v11 = vshll.u32 %v2613_v31, %v1129_v4 }
 0x289   : > { %v1909_v18 = vsub.s32 0, %v3951_v35  ;;  %v1137_v47 = vor.u32 %v1136_v52, %v1135_v51  ;;  %v1140_v63 = vor.u32 %v1139_v20, %v1138_v12  ;;  %v1144_v8 = vshll.u32 %v2614_v33, %v1129_v4 }
 0x28a   : > { %v1095_v59 = vxor.u32 2147483648, %v1094_v60  ;;  %v1145_v3 = vshrl.u32 %v2615_v40, %v1130_v6  ;;  %v1143_v16 = vor.u32 %v1142_v46, %v1141_v11  ;;  %v1163_v1 = vshll.u32 %v1123_v9, 8 }
 0x28b   : > { %v2233_v24 = vmin.u32 %v1909_v18, %v3951_v35  ;;  %v1131_v30 = vshrl.u32 %v2610_v23, %v1130_v6  ;;  %v2236_v41 = vadd.s32 4294967169, %v1951_v45  ;;  %vm1147_vm12 = vcmp.lt.s32.totalorder %v1128_v38, 1 }
 0x28c   : > { %v1096_v19 = vsel %vm1013_vm4, %v1095_v59, %v1094_v60  ;;  %v1146_v0 = vor.u32 %v1145_v3, %v1144_v8  ;;  %vm1150_vm13 = vcmp.lt.s32.totalorder %v1128_v38, 4  ;;  %vm1148_vm14 = vcmp.lt.s32.totalorder %v1128_v38, 2 }
 0x28d   : > { %v1099_v32 = vsel %vm3897_vm3, %v3704_v54, %v1096_v19  ;;  %v1911_v15 = vclz %v2233_v24  ;;  %v1152_v44 = vsel %vm1150_vm13, %v1140_v63, 2102212464  ;;  %v1155_v28 = vsel %vm1147_vm12, %v1134_v42, %v1137_v47 }
 0x28e   : > { %2463 = vcosq.f32 %v1099_v32  ;;  %vm1149_vm15 = vcmp.lt.s32.totalorder %v1128_v38, 3  ;;  %v1156_v36 = vsel %vm1150_vm13, %v1143_v16, 920167782  ;;  %v1159_v26 = vsel %vm1147_vm12, %v1137_v47, %v1140_v63 }
 0x28f   : > { %2465 = vsinq.f32 %v1099_v32  ;;  %v2234_v34 = vadd.s32 4294967294, %v1911_v15  ;;  %v1151_v14 = vsel %vm1147_vm12, %v1131_v30, %v1134_v42  ;;  %v1157_v57 = vsel %vm1149_vm15, %v1140_v63, %v1156_v36 }
 0x290   : > { %v1160_v21 = vsel %vm1150_vm13, %v1146_v0, 1326507024  ;;  %v1957_v56 = vadd.s32 1, %v2236_v41  ;;  %v1153_v37 = vsel %vm1149_vm15, %v1137_v47, %v1152_v44  ;;  %v1158_v48 = vsel %vm1148_vm14, %v1155_v28, %v1157_v57 }
 0x291   : > { %vm2235_vm0 = vcmp.lt.s32.totalorder %v2234_v34, 0  ;;  %v1161_v4 = vsel %vm1149_vm15, %v1143_v16, %v1160_v21  ;;  %v3970_v61 = vmul.u32.u64.low %v1163_v1, %v1158_v48  ;;  %v3971_v50 = vmul.u32.u64.high %v1163_v1, %v1158_v48, %v3970_v61 }
 0x292   : > { %v1914_v53 = vsel %vm2235_vm0, 0, %v2234_v34  ;;  %v1162_v6 = vsel %vm1148_vm14, %v1159_v26, %v1161_v4  ;;  %v1899_v22 = vadd.s32 %v3891_v39, %v3907_v5  ;;  %vm1958_vm1 = vcmp.gt.s32.totalorder %v1957_v56, 0 }
 0x293   : > { %v1915_v13 = vsub.s32 32, %v1914_v53  ;;  %v1919_v9 = vsub.s32 4294967266, %v1914_v53  ;;  %v1154_v43 = vsel %vm1148_vm14, %v1151_v14, %v1153_v37  ;;  %v1959_v60 = vsel %vm1958_vm1, %v1957_v56, 0 }
 0x294   : > { %v3977_v52 = vmul.u32.u64.low %v1163_v1, %v1162_v6  ;;  %v3978_v20 = vmul.u32.u64.high %v1163_v1, %v1162_v6, %v3977_v52  ;;  %v1916_v58 = vshll.u32 %v3951_v35, %v1914_v53  ;;  %v1961_v12 = vand.u32 31, %v1959_v60 }
 0x295   : > { %v1917_v46 = vshrl.u32 %v1899_v22, %v1915_v13  ;;  %v1920_v51 = vadd.s32 127, %v1919_v9  ;;  %v1929_v45 = vsub.s32 4, %v3941_v55  ;;  %v1173_v59 = vadd.s32 1, %v3971_v50 }
 0x296   : > { %vm1103_vm2 = vweird.f32 %v3704_v54  ;;  %vm1106_vm3 = vcmp.lt.s32.totalorder %v3943_v62, 2  ;;  %vm1845_vm4 = vcmp.lt.s32.totalorder %v3744_v49, 0  ;;  %vm1107_vm5 = vcmp.eq.s32.totalorder %v3943_v62, 0 }
 0x297   : > { %v1918_v39 = vor.u32 %v1917_v46, %v1916_v58  ;;  %v1921_v5 = vshll.u32 %v1920_v51, 23  ;;  %v1170_v38 = vmul.u32 %v1163_v1, %v1154_v43  ;;  %vm1172_vm6 = vc.u32 %v3978_v20, %v3970_v61 }
 0x298   : > { %v1962_v35 = vsub.s32 32, %v1961_v12  ;;  %vm1110_vm7 = vcmp.eq.s32.totalorder %v3943_v62, 2  ;;  %vm3992_vm8 = vcmp.le.f32.partialorder %v1843_v2, 0.7853982  ;;  %v1174_v11 = vsel %vm1172_vm6, %v1173_v59, %v3971_v50 }
 0x299   : > { %v1922_v42 = vor.u32 4788187, %v1921_v5  ;;  %v1954_v47 = vand.u32 8388607, %v1947_v17  ;;  %v1930_v8 = vsel %vm1845_vm4, %v1929_v45, %v3941_v55  ;;  %v1175_v3 = vadd.s32 %v1174_v11, %v1170_v38 }
 0x29a   : > { %v4002_v19 = vshrl.u32 %v1959_v60, 5  ;;  %v1964_v24 = vshll.u32 %v2610_v23, %v1961_v12  ;;  %v1925_v32 = vcvt.s32.f32 %v1918_v39  ;;  %v1967_v30 = vshll.u32 %v2611_v27, %v1961_v12 }
 0x29b   : > { %v2464_v63 = vpop.eup %2463  ;;  %v1923_v1 = vand.u32 2147483647, %v1922_v42  ;;  %v1176_v41 = vadd.s32 536870912, %v1175_v3  ;;  %v1965_v15 = vshrl.u32 %v2611_v27, %v1962_v35  ;;  %v1968_v44 = vshrl.u32 %v2612_v29, %v1962_v35 }
 0x29c   : > { %v2466_v2 = vpop.eup %2465  ;;  %v1111_v16 = vxor.u32 2147483648, %v2464_v63  ;;  %v1971_v34 = vshrl.u32 %v2613_v31, %v1962_v35  ;;  %v1974_v36 = vshrl.u32 %v2614_v33, %v1962_v35  ;;  %v1970_v57 = vshll.u32 %v2612_v29, %v1961_v12 }
 0x29d   : > { %v1108_v0 = vxor.u32 2147483648, %v2466_v2  ;;  %v1926_v28 = vmul.f32 %v1925_v32, %v1923_v1  ;;  %v4014_v14 = vshrl.u32 %v1176_v41, 30  ;;  %v1977_v27 = vshrl.u32 %v2615_v40, %v1962_v35 }
 0x29e   : > { %v1112_v55 = vsel %vm1110_vm7, %v1111_v16, %v2466_v2  ;;  %v1973_v37 = vshll.u32 %v2613_v31, %v1961_v12  ;;  %v1976_v48 = vshll.u32 %v2614_v33, %v1961_v12  ;;  %v1966_v6 = vor.u32 %v1965_v15, %v1964_v24 }
 0x29f   : > { %v1109_v26 = vsel %vm1107_vm5, %v2464_v63, %v1108_v0  ;;  %v1927_v56 = vxor.u32 2147483648, %v1926_v28  ;;  %v1178_v53 = vshll.u32 %v4014_v14, 30  ;;  %v1969_v50 = vor.u32 %v1968_v44, %v1967_v30 }
 0x2a0   : > { %v1113_v21 = vsel %vm1106_vm3, %v1109_v26, %v1112_v55  ;;  %v1972_v40 = vor.u32 %v1971_v34, %v1970_v57  ;;  %v1975_v22 = vor.u32 %v1974_v36, %v1973_v37  ;;  %v1978_v62 = vor.u32 %v1977_v27, %v1976_v48 }
 0x2a1   : > { %v1114_v4 = vsel %vm1103_vm2, nan, %v1113_v21  ;;  %v1928_v29 = vsel %vm1845_vm4, %v1927_v56, %v1926_v28  ;;  %v1932_v33 = vsel %vm3992_vm8, 0, %v1930_v8  ;;  %v1179_v54 = vsub.s32 %v1175_v3, %v1178_v53 }
 0x2a2   : > { %2057 = vst [vmem:[%s3092_s22 + $0x30] sm:$0xff] %v1114_v4  ;;  %v1931_v31 = vsel %vm3992_vm8, %v3744_v49, %v1928_v29  ;;  %v1955_v13 = vor.u32 8388608, %v1954_v47  ;;  %v1963_v9 = vshrl.u32 %v2610_v23, %v1962_v35  ;;  %vm1979_vm9 = vcmp.lt.s32.totalorder %v4002_v19, 1 }
 0x2a3   : > { %2467 = vcosq.f32 %v1931_v31  ;;  %vm1981_vm10 = vcmp.lt.s32.totalorder %v4002_v19, 3  ;;  %v1181_v43 = vsub.s32 0, %v1179_v54  ;;  %vm1982_vm11 = vcmp.lt.s32.totalorder %v4002_v19, 4 }
 0x2a4   : > { %2469 = vsinq.f32 %v1931_v31  ;;  %v1987_v52 = vsel %vm1979_vm9, %v1966_v6, %v1969_v50  ;;  %v1984_v60 = vsel %vm1982_vm11, %v1972_v40, 2102212464  ;;  %v1988_v58 = vsel %vm1982_vm11, %v1975_v22, 920167782 }
 0x2a5   : > { %v1991_v46 = vsel %vm1979_vm9, %v1969_v50, %v1972_v40  ;;  %v1992_v51 = vsel %vm1982_vm11, %v1978_v62, 1326507024  ;;  %v2205_v12 = vmin.u32 %v1181_v43, %v1179_v54  ;;  %vm1980_vm12 = vcmp.lt.s32.totalorder %v4002_v19, 2 }
 0x2a6   : > { %v1989_v23 = vsel %vm1981_vm10, %v1972_v40, %v1988_v58  ;;  %v1993_v45 = vsel %vm1981_vm10, %v1975_v22, %v1992_v51  ;;  %v1995_v5 = vshll.u32 %v1955_v13, 8  ;;  %v1936_v38 = vadd.s32 3, %v1932_v33 }
 0x2a7   : > { %v1990_v59 = vsel %vm1980_vm12, %v1987_v52, %v1989_v23  ;;  %v1994_v39 = vsel %vm1980_vm12, %v1991_v46, %v1993_v45  ;;  %v1183_v35 = vclz %v2205_v12  ;;  %v1983_v18 = vsel %vm1979_vm9, %v1963_v9, %v1966_v6 }
 0x2a8   : > { %v1985_v42 = vsel %vm1981_vm10, %v1969_v50, %v1984_v60  ;;  %v4050_v11 = vmul.u32.u64.low %v1995_v5, %v1994_v39  ;;  %v4051_v47 = vmul.u32.u64.high %v1995_v5, %v1994_v39, %v4050_v11  ;;  %v1937_v2 = vand.u32 3, %v1936_v38 }
 0x2a9   : > { %v4053_v63 = vmul.u32.u64.low %v1995_v5, %v1990_v59  ;;  %v4054_v8 = vmul.u32.u64.high %v1995_v5, %v1990_v59, %v4053_v63  ;;  %v2206_v3 = vadd.s32 4294967294, %v1183_v35  ;;  %v1986_v24 = vsel %vm1980_vm12, %v1983_v18, %v1985_v42 }
 0x2aa   : > { %v1171_v32 = vadd.s32 %v3970_v61, %v3978_v20  ;;  %v2002_v0 = vmul.u32 %v1995_v5, %v1986_v24  ;;  %vm1942_vm15 = vcmp.eq.s32.totalorder %v1937_v2, 2  ;;  %vm1939_vm0 = vcmp.eq.s32.totalorder %v1937_v2, 0 }
 0x2ab   : > { %vm2207_vm13 = vcmp.lt.s32.totalorder %v2206_v3, 0  ;;  %vm2004_vm14 = vc.u32 %v4051_v47, %v4053_v63  ;;  %v2005_v1 = vadd.s32 1, %v4054_v8  ;;  %vm1938_vm1 = vcmp.lt.s32.totalorder %v1937_v2, 2 }
 0x2ac   : > { %v1186_v16 = vsel %vm2207_vm13, 0, %v2206_v3  ;;  %vm1935_vm2 = vweird.f32 %v3744_v49  ;;  %vm1117_vm3 = vcmp.lt.s32.totalorder %v3841_v25, 0  ;;  %v1201_v33 = vsub.s32 4, %v4014_v14 }
 0x2ad   : > { %v1187_v19 = vsub.s32 32, %v1186_v16  ;;  %v1191_v30 = vsub.s32 4294967266, %v1186_v16  ;;  %v2006_v41 = vsel %vm2004_vm14, %v2005_v1, %v4054_v8  ;;  %v1188_v44 = vshll.u32 %v1179_v54, %v1186_v16 }
 0x2ae   : > { %v2007_v34 = vadd.s32 %v2006_v41, %v2002_v0  ;;  %vm1116_vm4 = vcmp.le.f32.partialorder %v1115_v10, 0.7853982  ;;  %v1202_v43 = vsel %vm1117_vm3, %v1201_v33, %v4014_v14  ;;  %v2003_v46 = vadd.s32 %v4053_v63, %v4051_v47 }
 0x2af   : > { %v1189_v55 = vshrl.u32 %v1171_v32, %v1187_v19  ;;  %v1192_v28 = vadd.s32 127, %v1191_v30  ;;  %v1204_v60 = vsel %vm1116_vm4, 0, %v1202_v43  ;;  %vm1207_vm9 = vweird.f32 %v3841_v25 }
 0x2b0   : > { %v2468_v15 = vpop.eup %2467  ;;  %v2008_v56 = vadd.s32 536870912, %v2007_v34  ;;  %v1208_v23 = vadd.s32 3, %v1204_v60  ;;  %vm1949_vm10 = vcmp.lt.s32.totalorder %v3932_v7, 0  ;;  %vm1948_vm11 = vcmp.le.f32.partialorder %v1947_v17, 0.7853982 }
 0x2b1   : > { %v2470_v36 = vpop.eup %2469  ;;  %v1943_v26 = vxor.u32 2147483648, %v2468_v15  ;;  %v1190_v27 = vor.u32 %v1189_v55, %v1188_v44  ;;  %v1193_v21 = vshll.u32 %v1192_v28, 23 }
 0x2b2   : > { %v1940_v57 = vxor.u32 2147483648, %v2470_v36  ;;  %v2009_v48 = vshrl.u32 %v2008_v56, 30  ;;  %v1209_v38 = vand.u32 3, %v1208_v23 }
 0x2b3   : > { %v1944_v61 = vsel %vm1942_vm15, %v1943_v26, %v2470_v36  ;;  %v1194_v37 = vor.u32 4788187, %v1193_v21  ;;  %v1197_v50 = vcvt.s32.f32 %v1190_v27  ;;  %vm2039_vm15 = vweird.f32 %v3932_v7 }
 0x2b4   : > { %v1941_v20 = vsel %vm1939_vm0, %v2468_v15, %v1940_v57  ;;  %v2010_v29 = vshll.u32 %v2009_v48, 30  ;;  %vm1214_vm6 = vcmp.eq.s32.totalorder %v1209_v38, 2  ;;  %vm1211_vm7 = vcmp.eq.s32.totalorder %v1209_v38, 0 }
 0x2b5   : > { %v1945_v4 = vsel %vm1938_vm1, %v1941_v20, %v1944_v61  ;;  %v1195_v6 = vand.u32 2147483647, %v1194_v37  ;;  %vm1210_vm8 = vcmp.lt.s32.totalorder %v1209_v38, 2  ;;  %v2033_v32 = vsub.s32 4, %v2009_v48 }
 0x2b6   : > { %v1946_v53 = vsel %vm1935_vm2, nan, %v1945_v4  ;;  %v2011_v22 = vsub.s32 %v2007_v34, %v2010_v29 }
 0x2b7   : > { %2065 = vst [vmem:[%s3092_s22 + $0x70] sm:$0xff] %v1946_v53  ;;  %v1198_v40 = vmul.f32 %v1197_v50, %v1195_v6  ;;  %v2034_v0 = vsel %vm1949_vm10, %v2033_v32, %v2009_v48 }
 0x2b8   : > { %v2013_v31 = vsub.s32 0, %v2011_v22  ;;  %v2036_v41 = vsel %vm1948_vm11, 0, %v2034_v0 }
 0x2b9   : > { %v1199_v62 = vxor.u32 2147483648, %v1198_v40 }
 0x2ba   : > { %v2237_v13 = vmin.u32 %v2013_v31, %v2011_v22 }
 0x2bb   : > { %v1200_v54 = vsel %vm1117_vm3, %v1199_v62, %v1198_v40 }
 0x2bc   : > { %v1203_v49 = vsel %vm1116_vm4, %v3841_v25, %v1200_v54  ;;  %v2015_v9 = vclz %v2237_v13  ;;  %v2040_v25 = vadd.s32 3, %v2036_v41 }
 0x2bd   : > { %2471 = vcosq.f32 %v1203_v49 }
 0x2be   : > { %2473 = vsinq.f32 %v1203_v49  ;;  %v2238_v52 = vadd.s32 4294967294, %v2015_v9  ;;  %v2041_v15 = vand.u32 3, %v2040_v25 }
 0x2c0   : > { %vm2239_vm5 = vcmp.lt.s32.totalorder %v2238_v52, 0  ;;  %vm2046_vm12 = vcmp.eq.s32.totalorder %v2041_v15, 2  ;;  %vm2043_vm13 = vcmp.eq.s32.totalorder %v2041_v15, 0  ;;  %vm2042_vm14 = vcmp.lt.s32.totalorder %v2041_v15, 2 }
 0x2c1   : > { %v2018_v58 = vsel %vm2239_vm5, 0, %v2238_v52 }
 0x2c2   : > { %v2019_v51 = vsub.s32 32, %v2018_v58  ;;  %v2023_v12 = vsub.s32 4294967266, %v2018_v58  ;;  %v2020_v45 = vshll.u32 %v2011_v22, %v2018_v58 }
 0x2c4   : > { %v2021_v10 = vshrl.u32 %v2003_v46, %v2019_v51  ;;  %v2024_v59 = vadd.s32 127, %v2023_v12 }
 0x2c6   : > { %v2022_v39 = vor.u32 %v2021_v10, %v2020_v45  ;;  %v2025_v5 = vshll.u32 %v2024_v59, 23 }
 0x2c8   : > { %v2026_v35 = vor.u32 4788187, %v2025_v5  ;;  %v2029_v8 = vcvt.s32.f32 %v2022_v39 }
 0x2ca   : > { %v2472_v18 = vpop.eup %2471  ;;  %v2027_v11 = vand.u32 2147483647, %v2026_v35 }
 0x2cb   : > { %v2474_v42 = vpop.eup %2473  ;;  %v1215_v14 = vxor.u32 2147483648, %v2472_v18 }
 0x2cc   : > { %v1212_v3 = vxor.u32 2147483648, %v2474_v42  ;;  %v2030_v63 = vmul.f32 %v2029_v8, %v2027_v11 }
 0x2cd   : > { %v1216_v47 = vsel %vm1214_vm6, %v1215_v14, %v2474_v42 }
 0x2ce   : > { %v1213_v24 = vsel %vm1211_vm7, %v2472_v18, %v1212_v3  ;;  %v2031_v16 = vxor.u32 2147483648, %v2030_v63 }
 0x2cf   : > { %v1217_v2 = vsel %vm1210_vm8, %v1213_v24, %v1216_v47 }
 0x2d0   : > { %v1218_v1 = vsel %vm1207_vm9, nan, %v1217_v2  ;;  %v2032_v19 = vsel %vm1949_vm10, %v2031_v16, %v2030_v63 }
 0x2d1   : > { %2058 = vst [vmem:[%s3092_s22 + $0x38] sm:$0xff] %v1218_v1  ;;  %v2035_v30 = vsel %vm1948_vm11, %v3932_v7, %v2032_v19 }
 0x2d2   : > { %2475 = vcosq.f32 %v2035_v30 }
 0x2d3   : > { %2477 = vsinq.f32 %v2035_v30 }
 0x2df   : > { %v2476_v44 = vpop.eup %2475 }
 0x2e0   : > { %v2478_v55 = vpop.eup %2477  ;;  %v2047_v28 = vxor.u32 2147483648, %v2476_v44 }
 0x2e1   : > { %v2044_v34 = vxor.u32 2147483648, %v2478_v55 }
 0x2e2   : > { %v2048_v17 = vsel %vm2046_vm12, %v2047_v28, %v2478_v55 }
 0x2e3   : > { %v2045_v36 = vsel %vm2043_vm13, %v2476_v44, %v2044_v34 }
 0x2e4   : > { %v2049_v26 = vsel %vm2042_vm14, %v2045_v36, %v2048_v17 }
 0x2e5   : > { %v2050_v57 = vsel %vm2039_vm15, nan, %v2049_v26 }
 0x2e6   : > { %2066 = vst [vmem:[%s3092_s22 + $0x78] sm:$0xff] %v2050_v57 }
 0x2e7   : > { %2546 = shalt.err (!%p2543_p0)
}
 0x2e8   : > { %s2547_s21 = scalar_lea.hbm %s4081_s7, 2048  ;;  %s2551_s29 = scalar_lea.hbm %s4130_s3, 16384 }
 0x2e9   : > { %p2548_p5 = scmp.ne.s32.totalorder %s4081_s7, %s2547_s21  ;;  %p2552_p4 = scmp.lt.s32.totalorder %s4081_s7, %s4130_s3 }
 0x2ea   : > { %p2553_p6 = scmp.lt.s32.totalorder %s2551_s29, %s2547_s21 }
 0x2eb   : > { %p2549_p9 = pnand %p2548_p5, %p4174_p10 }
 0x2ec   : > { %p2554_p8 = por %p2553_p6, %p2552_p4 }
 0x2ed   : > { %p2550_p1 = pneg %p2549_p9 }
 0x2ef   : > { %p2555_p3 = pnand %p2554_p8, %p2550_p1 }
 0x2f1   : > { %2558 = shalt.err (!%p2555_p3)
}
 0x2f2   : > { %s2617_s17 = smov 256   ;;  %s2618_s22 = smov 16  }
 0x2f3   : > { %2351 = dma.vmem_to_hbm [thread:$0]  (%p4174_p10), %s4083_s25, 2048, %s4081_s7, %s2068_s16, %s2617_s17, %s2617_s17, %s2618_s22  }
 0x2f4 PF: > { %p2368_p7 = scmp.ge.s32.totalorder %s2601_s15, 2  ;;  %s2097_s23 = sand.u32 1, %s2589_s12  }
 0x2f5   : > { %p4175_p11 = scmp.ne.s32.totalorder %s4136_s19, 0  ;;  %s2098_s30 = scalar_lea.sflag [#allocation4], %s2097_s23 }
 0x2f7   : > { %p2362_p12 = pnand %p2368_p7, %p4175_p11 }
 0x2f9   : > { %p2363_p2 = pneg %p2362_p12 }
 0x2fb   : > { %2584 = dma.done.wait (%p2363_p2), %s2098_s30, 2048  }
 0x2fc   : > { %2586 = vsyncadd (%p2363_p2), %s2098_s30, 4294965248  ;;  %p17_p13 = scmp.ge.s32.totalorder %s2692_s24, 10   ;;  %s4176_s12 = smov %s2593_s13 }
 0x2fd   : > { %s4177_s13 = smov %s2597_s14  ;;  %s4178_s14 = smov %s2709_s5 }
 0x2fe   : > { %s4179_s15 = smov %s2692_s24  ;;  %19 = sbr.rel (!%p17_p13) target bundleno = 6 (0x6), region = 81 }
 0x303   :  { %2103 = vsyncpa [#allocation3], 1 }
 0x304   :  { %2105 = vsyncpa [#allocation3 + $0x1], 1 }
 0x305   :  { %2106 = vsyncpa [#allocation6], 1 }
 0x306   :  { %2107 = vsyncpa [#allocation4], 1 }
 0x307   :  { %2109 = vsyncpa [#allocation4 + $0x1], 1 }

</bundles_post_ra>
